<compile_context>
chip_gen: v7x
topology: tpu7x:2x2x1
jax: 0.10.0
libtpu: 0.0.40
codegen_flags: <defaults>
</compile_context>

<pallas_src>
import math

import jax
import jax.numpy as jnp
from jax.experimental import pallas as pl
from jax.experimental.pallas import tpu as pltpu

# ----------------------------- model config (small) -------------------------
B = 2            # batch
S = 8            # sequence length (<= max_length=30, as in the module)
H = 32           # hidden width ("text_width")
NH = 2           # attention heads
HD = H // NH     # head dim
FF = 64          # MLP intermediate width
NUM_LAYERS = 2
VOCAB = 100
MAX_POS = 30
N_TYPES = 2
EPS = 1e-12      # BERT LayerNorm eps
NEG_INF = -1e9
DTYPE = jnp.float32


def _gelu_erf(x):
    # Exact (erf-based) GELU, matching HF BERT's gelu activation.
    return 0.5 * x * (1.0 + jax.lax.erf(x * (1.0 / math.sqrt(2.0))))


def _layer_norm(x, g, b):
    mu = jnp.mean(x, axis=-1, keepdims=True)
    xc = x - mu
    var = jnp.mean(xc * xc, axis=-1, keepdims=True)
    return xc * jax.lax.rsqrt(var + EPS) * g + b


# ----------------------------- fused Pallas kernel ---------------------------
def _make_fused_kernel(bsz, seq, hid, nheads, num_layers):
    hd = hid // nheads
    scale = 1.0 / math.sqrt(hd)

    def kernel(emb_ref, mask_ref, eg_ref, eb_ref,
               wqkv_ref, bqkv_ref, wo_ref, bo_ref, g1_ref, be1_ref,
               w1_ref, b1_ref, w2_ref, b2_ref, g2_ref, be2_ref,
               o_ref, ctx_ref):
        # Activations stay resident as a (B*S, H) slab for the whole forward.
        x = _layer_norm(emb_ref[...].astype(jnp.float32), eg_ref[...], eb_ref[...])
        mask_add = mask_ref[...].astype(jnp.float32)          # (B, S) additive

        # TODO(synk): at production sizes cast MXU operands to bf16 (keep f32
        # accumulation) and keep per-layer weights (not all layers) resident
        # for the v7x 64 MiB VMEM budget; unnecessary at this toy scale.
        for l in range(num_layers):                           # static unroll
            # Fused QKV projection: one MXU matmul for all of Q, K, V.
            qkv = (jnp.dot(x, wqkv_ref[l], preferred_element_type=jnp.float32)
                   + bqkv_ref[l])                             # (B*S, 3H)
            q = qkv[:, 0 * hid:1 * hid]
            k = qkv[:, 1 * hid:2 * hid]
            v = qkv[:, 2 * hid:3 * hid]

            # Per-batch, per-head attention (tiny static loops: B*NH = 4).
            for b in range(bsz):
                rows = slice(b * seq, (b + 1) * seq)
                madd = mask_add[b:b + 1, :]                   # (1, S)
                for h in range(nheads):
                    cols = slice(h * hd, (h + 1) * hd)
                    qh = q[rows, cols]
                    kh = k[rows, cols]
                    vh = v[rows, cols]
                    sc = jax.lax.dot_general(
                        qh, kh, (((1,), (1,)), ((), ())),
                        preferred_element_type=jnp.float32) * scale + madd
                    sc = sc - jnp.max(sc, axis=-1, keepdims=True)
                    p = jnp.exp(sc)
                    p = p * pl.reciprocal(jnp.sum(p, axis=-1, keepdims=True),
                                          approx=True)
                    # Write head context straight into its (rows, cols) slot
                    # of the VMEM scratch slab (no concatenate relayout).
                    ctx_ref[rows, cols] = jnp.dot(
                        p, vh, preferred_element_type=jnp.float32)

            ctx = ctx_ref[...]                                # (B*S, H)
            attn = (jnp.dot(ctx, wo_ref[l], preferred_element_type=jnp.float32)
                    + bo_ref[l])
            h1 = _layer_norm(x + attn, g1_ref[l], be1_ref[l])

            ff = (jnp.dot(h1, w1_ref[l], preferred_element_type=jnp.float32)
                  + b1_ref[l])
            ff = _gelu_erf(ff)
            ff = (jnp.dot(ff, w2_ref[l], preferred_element_type=jnp.float32)
                  + b2_ref[l])
            x = _layer_norm(h1 + ff, g2_ref[l], be2_ref[l])

        o_ref[...] = x.reshape(bsz, seq, hid).astype(o_ref.dtype)

    return kernel


# ----------------------------- wrapper ---------------------------------------
def _pack_layer_params(layers):
    """Stack per-layer weights along a leading [L, ...] axis; fuse Wq/Wk/Wv."""
    def stk(name):
        return jnp.stack([lp[name] for lp in layers], axis=0)

    wqkv = jnp.stack(
        [jnp.concatenate([lp["wq"], lp["wk"], lp["wv"]], axis=1) for lp in layers],
        axis=0)                                               # (L, H, 3H)
    bqkv = jnp.stack(
        [jnp.concatenate([lp["bq"], lp["bk"], lp["bv"]], axis=1) for lp in layers],
        axis=0)                                               # (L, 1, 3H)
    return (wqkv, bqkv, stk("wo"), stk("bo"), stk("ln1_g"), stk("ln1_b"),
            stk("w1"), stk("b1"), stk("w2"), stk("b2"), stk("ln2_g"), stk("ln2_b"))


def text_encoder_forward(params, input_ids, attention_mask):
    """Equivalent of TextEncoder.forward on pre-tokenized inputs.

    Returns last_hidden_state of shape [B, S, H].
    """
    bsz, seq = input_ids.shape
    # TODO(synk): the HF tokenizer (string -> ids) has no Pallas equivalent;
    # the kernel consumes pre-tokenized (input_ids, attention_mask).
    positions = jnp.arange(seq, dtype=jnp.int32)
    # Embedding-table gathers are host-side glue; everything downstream runs
    # inside one fused Pallas kernel.
    emb = (jnp.take(params["word_emb"], input_ids, axis=0)
           + params["pos_emb"][positions][None, :, :]
           + params["type_emb"][0][None, None, :]).astype(DTYPE)
    emb2d = emb.reshape(bsz * seq, H)
    mask_add = (1.0 - attention_mask.astype(jnp.float32)) * NEG_INF   # (B, S)

    packed = _pack_layer_params(params["layers"])
    inputs = (emb2d, mask_add,
              params["emb_ln_g"].reshape(1, -1), params["emb_ln_b"].reshape(1, -1),
              *packed)

    kernel = _make_fused_kernel(bsz, seq, H, NH, NUM_LAYERS)
    return pl.pallas_call(
        kernel,
        out_shape=jax.ShapeDtypeStruct((bsz, seq, H), DTYPE),
        in_specs=[pl.BlockSpec(memory_space=pltpu.MemorySpace.VMEM)
                  for _ in inputs],
        out_specs=pl.BlockSpec(memory_space=pltpu.MemorySpace.VMEM),
        scratch_shapes=[pltpu.VMEM((bsz * seq, H), jnp.float32)],
    )(*inputs)


# ----------------------------- params -----------------------------------------
def init_params(key):
    def nrm(k, shape, scale=0.02):
        return (scale * jax.random.normal(k, shape)).astype(DTYPE)

    keys = iter(jax.random.split(key, 8 + NUM_LAYERS * 16))
    params = {
        "word_emb": nrm(next(keys), (VOCAB, H)),
        "pos_emb": nrm(next(keys), (MAX_POS, H)),
        "type_emb": nrm(next(keys), (N_TYPES, H)),
        "emb_ln_g": (1.0 + nrm(next(keys), (H,), 0.01)),
        "emb_ln_b": nrm(next(keys), (H,), 0.01),
        "layers": [],
    }
    for _ in range(NUM_LAYERS):
        lp = {
            "wq": nrm(next(keys), (H, H)), "bq": nrm(next(keys), (1, H), 0.01),
            "wk": nrm(next(keys), (H, H)), "bk": nrm(next(keys), (1, H), 0.01),
            "wv": nrm(next(keys), (H, H)), "bv": nrm(next(keys), (1, H), 0.01),
            "wo": nrm(next(keys), (H, H)), "bo": nrm(next(keys), (1, H), 0.01),
            "ln1_g": (1.0 + nrm(next(keys), (1, H), 0.01)),
            "ln1_b": nrm(next(keys), (1, H), 0.01),
            "w1": nrm(next(keys), (H, FF)), "b1": nrm(next(keys), (1, FF), 0.01),
            "w2": nrm(next(keys), (FF, H)), "b2": nrm(next(keys), (1, H), 0.01),
            "ln2_g": (1.0 + nrm(next(keys), (1, H), 0.01)),
            "ln2_b": nrm(next(keys), (1, H), 0.01),
        }
        params["layers"].append(lp)
    return params


# ----------------------------- pure-JAX reference -----------------------------
def reference_forward(params, input_ids, attention_mask):
    bsz, seq = input_ids.shape
    positions = jnp.arange(seq, dtype=jnp.int32)
    x = (jnp.take(params["word_emb"], input_ids, axis=0)
         + params["pos_emb"][positions][None, :, :]
         + params["type_emb"][0][None, None, :]).astype(jnp.float32)
    x = _layer_norm(x, params["emb_ln_g"], params["emb_ln_b"])
    mask_add = ((1.0 - attention_mask.astype(jnp.float32)) * NEG_INF)[:, None, :]
    for lp in params["layers"]:
        q = x @ lp["wq"] + lp["bq"]
        k = x @ lp["wk"] + lp["bk"]
        v = x @ lp["wv"] + lp["bv"]
        heads = []
        for h in range(NH):
            sl = slice(h * HD, (h + 1) * HD)
            sc = jnp.einsum("bqd,bkd->bqk", q[..., sl], k[..., sl]) / math.sqrt(HD)
            sc = sc + mask_add
            p = jax.nn.softmax(sc, axis=-1)
            heads.append(jnp.einsum("bqk,bkd->bqd", p, v[..., sl]))
        ctx = jnp.concatenate(heads, axis=-1)
        attn = ctx @ lp["wo"] + lp["bo"]
        h1 = _layer_norm(x + attn, lp["ln1_g"], lp["ln1_b"])
        ff = _gelu_erf(h1 @ lp["w1"] + lp["b1"]) @ lp["w2"] + lp["b2"]
        x = _layer_norm(h1 + ff, lp["ln2_g"], lp["ln2_b"])
    return x


if __name__ == "__main__":
    key = jax.random.PRNGKey(0)
    kp, kid = jax.random.split(key)
    params = init_params(kp)

    # synthetic "tokenized" batch: padding='longest' -> second row is padded
    input_ids = jax.random.randint(kid, (B, S), 1, VOCAB, dtype=jnp.int32)
    attention_mask = jnp.array(
        [[1] * S,
         [1] * 5 + [0] * (S - 5)], dtype=jnp.int32)
    input_ids = input_ids * attention_mask  # pad token id 0 on padded slots

    out = text_encoder_forward(params, input_ids, attention_mask)
    out = jax.block_until_ready(out)

    ref = reference_forward(params, input_ids, attention_mask)
    assert out.shape == (B, S, H)
    # Tolerance accounts for the EUP approximate reciprocal in the softmax.
    assert jnp.max(jnp.abs(out - ref)) < 2e-3, "mismatch vs pure-JAX reference"

    print("KERNEL_OK")
</pallas_src>

<mosaic_0001>
module attributes {stable_mosaic.version = 11 : i64} {
  func.func @kernel(%arg0: memref<16x32xf32, #tpu.memory_space<vmem>>, %arg1: memref<2x8xf32, #tpu.memory_space<vmem>>, %arg2: memref<1x32xf32, #tpu.memory_space<vmem>>, %arg3: memref<1x32xf32, #tpu.memory_space<vmem>>, %arg4: memref<2x32x96xf32, #tpu.memory_space<vmem>>, %arg5: memref<2x1x96xf32, #tpu.memory_space<vmem>>, %arg6: memref<2x32x32xf32, #tpu.memory_space<vmem>>, %arg7: memref<2x1x32xf32, #tpu.memory_space<vmem>>, %arg8: memref<2x1x32xf32, #tpu.memory_space<vmem>>, %arg9: memref<2x1x32xf32, #tpu.memory_space<vmem>>, %arg10: memref<2x32x64xf32, #tpu.memory_space<vmem>>, %arg11: memref<2x1x64xf32, #tpu.memory_space<vmem>>, %arg12: memref<2x64x32xf32, #tpu.memory_space<vmem>>, %arg13: memref<2x1x32xf32, #tpu.memory_space<vmem>>, %arg14: memref<2x1x32xf32, #tpu.memory_space<vmem>>, %arg15: memref<2x1x32xf32, #tpu.memory_space<vmem>>, %arg16: memref<2x8x32xf32, #tpu.memory_space<vmem>>, %arg17: memref<16x32xf32, #tpu.memory_space<vmem>>) attributes {dimension_semantics = [], scalar_prefetch = 0 : i64, scratch_operands = 1 : i64, tpu.core_type = #tpu.core_type<tc>} {
    %c0 = arith.constant 0 : index
    %c0_0 = arith.constant 0 : index
    %0 = vector.load %arg0[%c0, %c0_0] : memref<16x32xf32, #tpu.memory_space<vmem>>, vector<16x32xf32>
    %c0_1 = arith.constant 0 : index
    %c0_2 = arith.constant 0 : index
    %1 = vector.load %arg2[%c0_1, %c0_2] : memref<1x32xf32, #tpu.memory_space<vmem>>, vector<1x32xf32>
    %c0_3 = arith.constant 0 : index
    %c0_4 = arith.constant 0 : index
    %2 = vector.load %arg3[%c0_3, %c0_4] : memref<1x32xf32, #tpu.memory_space<vmem>>, vector<1x32xf32>
    %cst = arith.constant dense<0.000000e+00> : vector<16xf32>
    %3 = vector.multi_reduction <add>, %0, %cst [1] : vector<16x32xf32> to vector<16xf32>
    %4 = vector.shape_cast %3 : vector<16xf32> to vector<16x1xf32>
    %cst_5 = arith.constant 3.200000e+01 : f32
    %5 = vector.broadcast %cst_5 : f32 to vector<16x1xf32>
    %6 = arith.divf %4, %5 : vector<16x1xf32>
    %7 = vector.broadcast %6 : vector<16x1xf32> to vector<16x32xf32>
    %8 = arith.subf %0, %7 : vector<16x32xf32>
    %9 = arith.mulf %8, %8 : vector<16x32xf32>
    %cst_6 = arith.constant dense<0.000000e+00> : vector<16xf32>
    %10 = vector.multi_reduction <add>, %9, %cst_6 [1] : vector<16x32xf32> to vector<16xf32>
    %11 = vector.shape_cast %10 : vector<16xf32> to vector<16x1xf32>
    %cst_7 = arith.constant 3.200000e+01 : f32
    %12 = vector.broadcast %cst_7 : f32 to vector<16x1xf32>
    %13 = arith.divf %11, %12 : vector<16x1xf32>
    %cst_8 = arith.constant 9.99999996E-13 : f32
    %14 = vector.broadcast %cst_8 : f32 to vector<16x1xf32>
    %15 = arith.addf %13, %14 : vector<16x1xf32>
    %16 = math.rsqrt %15 : vector<16x1xf32>
    %17 = vector.broadcast %16 : vector<16x1xf32> to vector<16x32xf32>
    %18 = arith.mulf %8, %17 : vector<16x32xf32>
    %19 = vector.broadcast %1 : vector<1x32xf32> to vector<16x32xf32>
    %20 = arith.mulf %18, %19 : vector<16x32xf32>
    %21 = vector.broadcast %2 : vector<1x32xf32> to vector<16x32xf32>
    %22 = arith.addf %20, %21 : vector<16x32xf32>
    %c0_9 = arith.constant 0 : index
    %c0_10 = arith.constant 0 : index
    %23 = vector.load %arg1[%c0_9, %c0_10] : memref<2x8xf32, #tpu.memory_space<vmem>>, vector<2x8xf32>
    %c0_11 = arith.constant 0 : index
    %c0_12 = arith.constant 0 : index
    %c0_13 = arith.constant 0 : index
    %24 = vector.load %arg4[%c0_11, %c0_12, %c0_13] : memref<2x32x96xf32, #tpu.memory_space<vmem>>, vector<1x32x96xf32>
    %25 = vector.shape_cast %24 : vector<1x32x96xf32> to vector<32x96xf32>
    %cst_14 = arith.constant dense<0.000000e+00> : vector<16x96xf32>
    %26 = tpu.matmul %22, %25, %cst_14 {dimension_numbers = #tpu.dot_dimension_numbers<[1], [0], [0], [1], [0, 0, 1, 1], [], []>} : vector<16x32xf32>, vector<32x96xf32>, vector<16x96xf32> -> vector<16x96xf32>
    %c0_15 = arith.constant 0 : index
    %c0_16 = arith.constant 0 : index
    %c0_17 = arith.constant 0 : index
    %27 = vector.load %arg5[%c0_15, %c0_16, %c0_17] : memref<2x1x96xf32, #tpu.memory_space<vmem>>, vector<1x1x96xf32>
    %28 = vector.shape_cast %27 : vector<1x1x96xf32> to vector<1x96xf32>
    %29 = vector.broadcast %28 : vector<1x96xf32> to vector<16x96xf32>
    %30 = arith.addf %26, %29 : vector<16x96xf32>
    %31 = vector.extract_strided_slice %30 {offsets = [0, 0], sizes = [16, 32], strides = [1, 1]} : vector<16x96xf32> to vector<16x32xf32>
    %32 = vector.extract_strided_slice %30 {offsets = [0, 32], sizes = [16, 32], strides = [1, 1]} : vector<16x96xf32> to vector<16x32xf32>
    %33 = vector.extract_strided_slice %30 {offsets = [0, 64], sizes = [16, 32], strides = [1, 1]} : vector<16x96xf32> to vector<16x32xf32>
    %34 = vector.extract_strided_slice %23 {offsets = [0, 0], sizes = [1, 8], strides = [1, 1]} : vector<2x8xf32> to vector<1x8xf32>
    %35 = vector.extract_strided_slice %31 {offsets = [0, 0], sizes = [8, 16], strides = [1, 1]} : vector<16x32xf32> to vector<8x16xf32>
    %36 = vector.extract_strided_slice %32 {offsets = [0, 0], sizes = [8, 16], strides = [1, 1]} : vector<16x32xf32> to vector<8x16xf32>
    %37 = vector.extract_strided_slice %33 {offsets = [0, 0], sizes = [8, 16], strides = [1, 1]} : vector<16x32xf32> to vector<8x16xf32>
    %cst_18 = arith.constant dense<0.000000e+00> : vector<8x8xf32>
    %38 = tpu.matmul %35, %36, %cst_18 {dimension_numbers = #tpu.dot_dimension_numbers<[1], [1], [0], [0], [0, 0, 1, 0], [], []>} : vector<8x16xf32>, vector<8x16xf32>, vector<8x8xf32> -> vector<8x8xf32>
    %cst_19 = arith.constant 2.500000e-01 : f32
    %39 = vector.broadcast %cst_19 : f32 to vector<8x8xf32>
    %40 = arith.mulf %38, %39 : vector<8x8xf32>
    %41 = vector.broadcast %34 : vector<1x8xf32> to vector<8x8xf32>
    %42 = arith.addf %40, %41 : vector<8x8xf32>
    %cst_20 = arith.constant dense<0xFF800000> : vector<8xf32>
    %43 = vector.multi_reduction <maximumf>, %42, %cst_20 [1] : vector<8x8xf32> to vector<8xf32>
    %44 = vector.shape_cast %43 : vector<8xf32> to vector<8x1xf32>
    %45 = vector.broadcast %44 : vector<8x1xf32> to vector<8x8xf32>
    %46 = arith.subf %42, %45 : vector<8x8xf32>
    %47 = math.exp %46 : vector<8x8xf32>
    %cst_21 = arith.constant dense<0.000000e+00> : vector<8xf32>
    %48 = vector.multi_reduction <add>, %47, %cst_21 [1] : vector<8x8xf32> to vector<8xf32>
    %49 = vector.shape_cast %48 : vector<8xf32> to vector<8x1xf32>
    %50 = tpu.reciprocal %49 {approx = true} : vector<8x1xf32> -> vector<8x1xf32>
    %51 = vector.broadcast %50 : vector<8x1xf32> to vector<8x8xf32>
    %52 = arith.mulf %47, %51 : vector<8x8xf32>
    %cst_22 = arith.constant dense<0.000000e+00> : vector<8x16xf32>
    %53 = tpu.matmul %52, %37, %cst_22 {dimension_numbers = #tpu.dot_dimension_numbers<[1], [0], [0], [1], [0, 0, 1, 1], [], []>} : vector<8x8xf32>, vector<8x16xf32>, vector<8x16xf32> -> vector<8x16xf32>
    %c0_23 = arith.constant 0 : index
    %c0_24 = arith.constant 0 : index
    %54 = vector.load %arg17[%c0_23, %c0_24] : memref<16x32xf32, #tpu.memory_space<vmem>>, vector<8x16xf32>
    tpu.vector_store %arg17[%c0_23, %c0_24], %53 {strides = array<i32>} : memref<16x32xf32, #tpu.memory_space<vmem>>, vector<8x16xf32>,
    %55 = vector.extract_strided_slice %31 {offsets = [0, 16], sizes = [8, 16], strides = [1, 1]} : vector<16x32xf32> to vector<8x16xf32>
    %56 = vector.extract_strided_slice %32 {offsets = [0, 16], sizes = [8, 16], strides = [1, 1]} : vector<16x32xf32> to vector<8x16xf32>
    %57 = vector.extract_strided_slice %33 {offsets = [0, 16], sizes = [8, 16], strides = [1, 1]} : vector<16x32xf32> to vector<8x16xf32>
    %cst_25 = arith.constant dense<0.000000e+00> : vector<8x8xf32>
    %58 = tpu.matmul %55, %56, %cst_25 {dimension_numbers = #tpu.dot_dimension_numbers<[1], [1], [0], [0], [0, 0, 1, 0], [], []>} : vector<8x16xf32>, vector<8x16xf32>, vector<8x8xf32> -> vector<8x8xf32>
    %cst_26 = arith.constant 2.500000e-01 : f32
    %59 = vector.broadcast %cst_26 : f32 to vector<8x8xf32>
    %60 = arith.mulf %58, %59 : vector<8x8xf32>
    %61 = vector.broadcast %34 : vector<1x8xf32> to vector<8x8xf32>
    %62 = arith.addf %60, %61 : vector<8x8xf32>
    %cst_27 = arith.constant dense<0xFF800000> : vector<8xf32>
    %63 = vector.multi_reduction <maximumf>, %62, %cst_27 [1] : vector<8x8xf32> to vector<8xf32>
    %64 = vector.shape_cast %63 : vector<8xf32> to vector<8x1xf32>
    %65 = vector.broadcast %64 : vector<8x1xf32> to vector<8x8xf32>
    %66 = arith.subf %62, %65 : vector<8x8xf32>
    %67 = math.exp %66 : vector<8x8xf32>
    %cst_28 = arith.constant dense<0.000000e+00> : vector<8xf32>
    %68 = vector.multi_reduction <add>, %67, %cst_28 [1] : vector<8x8xf32> to vector<8xf32>
    %69 = vector.shape_cast %68 : vector<8xf32> to vector<8x1xf32>
    %70 = tpu.reciprocal %69 {approx = true} : vector<8x1xf32> -> vector<8x1xf32>
    %71 = vector.broadcast %70 : vector<8x1xf32> to vector<8x8xf32>
    %72 = arith.mulf %67, %71 : vector<8x8xf32>
    %cst_29 = arith.constant dense<0.000000e+00> : vector<8x16xf32>
    %73 = tpu.matmul %72, %57, %cst_29 {dimension_numbers = #tpu.dot_dimension_numbers<[1], [0], [0], [1], [0, 0, 1, 1], [], []>} : vector<8x8xf32>, vector<8x16xf32>, vector<8x16xf32> -> vector<8x16xf32>
    %c0_30 = arith.constant 0 : index
    %c16 = arith.constant 16 : index
    %74 = vector.load %arg17[%c0_30, %c16] : memref<16x32xf32, #tpu.memory_space<vmem>>, vector<8x16xf32>
    tpu.vector_store %arg17[%c0_30, %c16], %73 {strides = array<i32>} : memref<16x32xf32, #tpu.memory_space<vmem>>, vector<8x16xf32>,
    %75 = vector.extract_strided_slice %23 {offsets = [1, 0], sizes = [1, 8], strides = [1, 1]} : vector<2x8xf32> to vector<1x8xf32>
    %76 = vector.extract_strided_slice %31 {offsets = [8, 0], sizes = [8, 16], strides = [1, 1]} : vector<16x32xf32> to vector<8x16xf32>
    %77 = vector.extract_strided_slice %32 {offsets = [8, 0], sizes = [8, 16], strides = [1, 1]} : vector<16x32xf32> to vector<8x16xf32>
    %78 = vector.extract_strided_slice %33 {offsets = [8, 0], sizes = [8, 16], strides = [1, 1]} : vector<16x32xf32> to vector<8x16xf32>
    %cst_31 = arith.constant dense<0.000000e+00> : vector<8x8xf32>
    %79 = tpu.matmul %76, %77, %cst_31 {dimension_numbers = #tpu.dot_dimension_numbers<[1], [1], [0], [0], [0, 0, 1, 0], [], []>} : vector<8x16xf32>, vector<8x16xf32>, vector<8x8xf32> -> vector<8x8xf32>
    %cst_32 = arith.constant 2.500000e-01 : f32
    %80 = vector.broadcast %cst_32 : f32 to vector<8x8xf32>
    %81 = arith.mulf %79, %80 : vector<8x8xf32>
    %82 = vector.broadcast %75 : vector<1x8xf32> to vector<8x8xf32>
    %83 = arith.addf %81, %82 : vector<8x8xf32>
    %cst_33 = arith.constant dense<0xFF800000> : vector<8xf32>
    %84 = vector.multi_reduction <maximumf>, %83, %cst_33 [1] : vector<8x8xf32> to vector<8xf32>
    %85 = vector.shape_cast %84 : vector<8xf32> to vector<8x1xf32>
    %86 = vector.broadcast %85 : vector<8x1xf32> to vector<8x8xf32>
    %87 = arith.subf %83, %86 : vector<8x8xf32>
    %88 = math.exp %87 : vector<8x8xf32>
    %cst_34 = arith.constant dense<0.000000e+00> : vector<8xf32>
    %89 = vector.multi_reduction <add>, %88, %cst_34 [1] : vector<8x8xf32> to vector<8xf32>
    %90 = vector.shape_cast %89 : vector<8xf32> to vector<8x1xf32>
    %91 = tpu.reciprocal %90 {approx = true} : vector<8x1xf32> -> vector<8x1xf32>
    %92 = vector.broadcast %91 : vector<8x1xf32> to vector<8x8xf32>
    %93 = arith.mulf %88, %92 : vector<8x8xf32>
    %cst_35 = arith.constant dense<0.000000e+00> : vector<8x16xf32>
    %94 = tpu.matmul %93, %78, %cst_35 {dimension_numbers = #tpu.dot_dimension_numbers<[1], [0], [0], [1], [0, 0, 1, 1], [], []>} : vector<8x8xf32>, vector<8x16xf32>, vector<8x16xf32> -> vector<8x16xf32>
    %c8 = arith.constant 8 : index
    %c0_36 = arith.constant 0 : index
    %95 = vector.load %arg17[%c8, %c0_36] : memref<16x32xf32, #tpu.memory_space<vmem>>, vector<8x16xf32>
    tpu.vector_store %arg17[%c8, %c0_36], %94 {strides = array<i32>} : memref<16x32xf32, #tpu.memory_space<vmem>>, vector<8x16xf32>,
    %96 = vector.extract_strided_slice %31 {offsets = [8, 16], sizes = [8, 16], strides = [1, 1]} : vector<16x32xf32> to vector<8x16xf32>
    %97 = vector.extract_strided_slice %32 {offsets = [8, 16], sizes = [8, 16], strides = [1, 1]} : vector<16x32xf32> to vector<8x16xf32>
    %98 = vector.extract_strided_slice %33 {offsets = [8, 16], sizes = [8, 16], strides = [1, 1]} : vector<16x32xf32> to vector<8x16xf32>
    %cst_37 = arith.constant dense<0.000000e+00> : vector<8x8xf32>
    %99 = tpu.matmul %96, %97, %cst_37 {dimension_numbers = #tpu.dot_dimension_numbers<[1], [1], [0], [0], [0, 0, 1, 0], [], []>} : vector<8x16xf32>, vector<8x16xf32>, vector<8x8xf32> -> vector<8x8xf32>
    %cst_38 = arith.constant 2.500000e-01 : f32
    %100 = vector.broadcast %cst_38 : f32 to vector<8x8xf32>
    %101 = arith.mulf %99, %100 : vector<8x8xf32>
    %102 = vector.broadcast %75 : vector<1x8xf32> to vector<8x8xf32>
    %103 = arith.addf %101, %102 : vector<8x8xf32>
    %cst_39 = arith.constant dense<0xFF800000> : vector<8xf32>
    %104 = vector.multi_reduction <maximumf>, %103, %cst_39 [1] : vector<8x8xf32> to vector<8xf32>
    %105 = vector.shape_cast %104 : vector<8xf32> to vector<8x1xf32>
    %106 = vector.broadcast %105 : vector<8x1xf32> to vector<8x8xf32>
    %107 = arith.subf %103, %106 : vector<8x8xf32>
    %108 = math.exp %107 : vector<8x8xf32>
    %cst_40 = arith.constant dense<0.000000e+00> : vector<8xf32>
    %109 = vector.multi_reduction <add>, %108, %cst_40 [1] : vector<8x8xf32> to vector<8xf32>
    %110 = vector.shape_cast %109 : vector<8xf32> to vector<8x1xf32>
    %111 = tpu.reciprocal %110 {approx = true} : vector<8x1xf32> -> vector<8x1xf32>
    %112 = vector.broadcast %111 : vector<8x1xf32> to vector<8x8xf32>
    %113 = arith.mulf %108, %112 : vector<8x8xf32>
    %cst_41 = arith.constant dense<0.000000e+00> : vector<8x16xf32>
    %114 = tpu.matmul %113, %98, %cst_41 {dimension_numbers = #tpu.dot_dimension_numbers<[1], [0], [0], [1], [0, 0, 1, 1], [], []>} : vector<8x8xf32>, vector<8x16xf32>, vector<8x16xf32> -> vector<8x16xf32>
    %c8_42 = arith.constant 8 : index
    %c16_43 = arith.constant 16 : index
    %115 = vector.load %arg17[%c8_42, %c16_43] : memref<16x32xf32, #tpu.memory_space<vmem>>, vector<8x16xf32>
    tpu.vector_store %arg17[%c8_42, %c16_43], %114 {strides = array<i32>} : memref<16x32xf32, #tpu.memory_space<vmem>>, vector<8x16xf32>,
    %c0_44 = arith.constant 0 : index
    %c0_45 = arith.constant 0 : index
    %116 = vector.load %arg17[%c0_44, %c0_45] : memref<16x32xf32, #tpu.memory_space<vmem>>, vector<16x32xf32>
    %c0_46 = arith.constant 0 : index
    %c0_47 = arith.constant 0 : index
    %c0_48 = arith.constant 0 : index
    %117 = vector.load %arg6[%c0_46, %c0_47, %c0_48] : memref<2x32x32xf32, #tpu.memory_space<vmem>>, vector<1x32x32xf32>
    %118 = vector.shape_cast %117 : vector<1x32x32xf32> to vector<32x32xf32>
    %cst_49 = arith.constant dense<0.000000e+00> : vector<16x32xf32>
    %119 = tpu.matmul %116, %118, %cst_49 {dimension_numbers = #tpu.dot_dimension_numbers<[1], [0], [0], [1], [0, 0, 1, 1], [], []>} : vector<16x32xf32>, vector<32x32xf32>, vector<16x32xf32> -> vector<16x32xf32>
    %c0_50 = arith.constant 0 : index
    %c0_51 = arith.constant 0 : index
    %c0_52 = arith.constant 0 : index
    %120 = vector.load %arg7[%c0_50, %c0_51, %c0_52] : memref<2x1x32xf32, #tpu.memory_space<vmem>>, vector<1x1x32xf32>
    %121 = vector.shape_cast %120 : vector<1x1x32xf32> to vector<1x32xf32>
    %122 = vector.broadcast %121 : vector<1x32xf32> to vector<16x32xf32>
    %123 = arith.addf %119, %122 : vector<16x32xf32>
    %124 = arith.addf %22, %123 : vector<16x32xf32>
    %c0_53 = arith.constant 0 : index
    %c0_54 = arith.constant 0 : index
    %c0_55 = arith.constant 0 : index
    %125 = vector.load %arg8[%c0_53, %c0_54, %c0_55] : memref<2x1x32xf32, #tpu.memory_space<vmem>>, vector<1x1x32xf32>
    %126 = vector.shape_cast %125 : vector<1x1x32xf32> to vector<1x32xf32>
    %c0_56 = arith.constant 0 : index
    %c0_57 = arith.constant 0 : index
    %c0_58 = arith.constant 0 : index
    %127 = vector.load %arg9[%c0_56, %c0_57, %c0_58] : memref<2x1x32xf32, #tpu.memory_space<vmem>>, vector<1x1x32xf32>
    %128 = vector.shape_cast %127 : vector<1x1x32xf32> to vector<1x32xf32>
    %cst_59 = arith.constant dense<0.000000e+00> : vector<16xf32>
    %129 = vector.multi_reduction <add>, %124, %cst_59 [1] : vector<16x32xf32> to vector<16xf32>
    %130 = vector.shape_cast %129 : vector<16xf32> to vector<16x1xf32>
    %cst_60 = arith.constant 3.200000e+01 : f32
    %131 = vector.broadcast %cst_60 : f32 to vector<16x1xf32>
    %132 = arith.divf %130, %131 : vector<16x1xf32>
    %133 = vector.broadcast %132 : vector<16x1xf32> to vector<16x32xf32>
    %134 = arith.subf %124, %133 : vector<16x32xf32>
    %135 = arith.mulf %134, %134 : vector<16x32xf32>
    %cst_61 = arith.constant dense<0.000000e+00> : vector<16xf32>
    %136 = vector.multi_reduction <add>, %135, %cst_61 [1] : vector<16x32xf32> to vector<16xf32>
    %137 = vector.shape_cast %136 : vector<16xf32> to vector<16x1xf32>
    %cst_62 = arith.constant 3.200000e+01 : f32
    %138 = vector.broadcast %cst_62 : f32 to vector<16x1xf32>
    %139 = arith.divf %137, %138 : vector<16x1xf32>
    %cst_63 = arith.constant 9.99999996E-13 : f32
    %140 = vector.broadcast %cst_63 : f32 to vector<16x1xf32>
    %141 = arith.addf %139, %140 : vector<16x1xf32>
    %142 = math.rsqrt %141 : vector<16x1xf32>
    %143 = vector.broadcast %142 : vector<16x1xf32> to vector<16x32xf32>
    %144 = arith.mulf %134, %143 : vector<16x32xf32>
    %145 = vector.broadcast %126 : vector<1x32xf32> to vector<16x32xf32>
    %146 = arith.mulf %144, %145 : vector<16x32xf32>
    %147 = vector.broadcast %128 : vector<1x32xf32> to vector<16x32xf32>
    %148 = arith.addf %146, %147 : vector<16x32xf32>
    %c0_64 = arith.constant 0 : index
    %c0_65 = arith.constant 0 : index
    %c0_66 = arith.constant 0 : index
    %149 = vector.load %arg10[%c0_64, %c0_65, %c0_66] : memref<2x32x64xf32, #tpu.memory_space<vmem>>, vector<1x32x64xf32>
    %150 = vector.shape_cast %149 : vector<1x32x64xf32> to vector<32x64xf32>
    %cst_67 = arith.constant dense<0.000000e+00> : vector<16x64xf32>
    %151 = tpu.matmul %148, %150, %cst_67 {dimension_numbers = #tpu.dot_dimension_numbers<[1], [0], [0], [1], [0, 0, 1, 1], [], []>} : vector<16x32xf32>, vector<32x64xf32>, vector<16x64xf32> -> vector<16x64xf32>
    %c0_68 = arith.constant 0 : index
    %c0_69 = arith.constant 0 : index
    %c0_70 = arith.constant 0 : index
    %152 = vector.load %arg11[%c0_68, %c0_69, %c0_70] : memref<2x1x64xf32, #tpu.memory_space<vmem>>, vector<1x1x64xf32>
    %153 = vector.shape_cast %152 : vector<1x1x64xf32> to vector<1x64xf32>
    %154 = vector.broadcast %153 : vector<1x64xf32> to vector<16x64xf32>
    %155 = arith.addf %151, %154 : vector<16x64xf32>
    %cst_71 = arith.constant 5.000000e-01 : f32
    %156 = vector.broadcast %cst_71 : f32 to vector<16x64xf32>
    %157 = arith.mulf %156, %155 : vector<16x64xf32>
    %cst_72 = arith.constant 0.707106769 : f32
    %158 = vector.broadcast %cst_72 : f32 to vector<16x64xf32>
    %159 = arith.mulf %155, %158 : vector<16x64xf32>
    %160 = math.erf %159 : vector<16x64xf32>
    %cst_73 = arith.constant 1.000000e+00 : f32
    %161 = vector.broadcast %cst_73 : f32 to vector<16x64xf32>
    %162 = arith.addf %161, %160 : vector<16x64xf32>
    %163 = arith.mulf %157, %162 : vector<16x64xf32>
    %c0_74 = arith.constant 0 : index
    %c0_75 = arith.constant 0 : index
    %c0_76 = arith.constant 0 : index
    %164 = vector.load %arg12[%c0_74, %c0_75, %c0_76] : memref<2x64x32xf32, #tpu.memory_space<vmem>>, vector<1x64x32xf32>
    %165 = vector.shape_cast %164 : vector<1x64x32xf32> to vector<64x32xf32>
    %cst_77 = arith.constant dense<0.000000e+00> : vector<16x32xf32>
    %166 = tpu.matmul %163, %165, %cst_77 {dimension_numbers = #tpu.dot_dimension_numbers<[1], [0], [0], [1], [0, 0, 1, 1], [], []>} : vector<16x64xf32>, vector<64x32xf32>, vector<16x32xf32> -> vector<16x32xf32>
    %c0_78 = arith.constant 0 : index
    %c0_79 = arith.constant 0 : index
    %c0_80 = arith.constant 0 : index
    %167 = vector.load %arg13[%c0_78, %c0_79, %c0_80] : memref<2x1x32xf32, #tpu.memory_space<vmem>>, vector<1x1x32xf32>
    %168 = vector.shape_cast %167 : vector<1x1x32xf32> to vector<1x32xf32>
    %169 = vector.broadcast %168 : vector<1x32xf32> to vector<16x32xf32>
    %170 = arith.addf %166, %169 : vector<16x32xf32>
    %171 = arith.addf %148, %170 : vector<16x32xf32>
    %c0_81 = arith.constant 0 : index
    %c0_82 = arith.constant 0 : index
    %c0_83 = arith.constant 0 : index
    %172 = vector.load %arg14[%c0_81, %c0_82, %c0_83] : memref<2x1x32xf32, #tpu.memory_space<vmem>>, vector<1x1x32xf32>
    %173 = vector.shape_cast %172 : vector<1x1x32xf32> to vector<1x32xf32>
    %c0_84 = arith.constant 0 : index
    %c0_85 = arith.constant 0 : index
    %c0_86 = arith.constant 0 : index
    %174 = vector.load %arg15[%c0_84, %c0_85, %c0_86] : memref<2x1x32xf32, #tpu.memory_space<vmem>>, vector<1x1x32xf32>
    %175 = vector.shape_cast %174 : vector<1x1x32xf32> to vector<1x32xf32>
    %cst_87 = arith.constant dense<0.000000e+00> : vector<16xf32>
    %176 = vector.multi_reduction <add>, %171, %cst_87 [1] : vector<16x32xf32> to vector<16xf32>
    %177 = vector.shape_cast %176 : vector<16xf32> to vector<16x1xf32>
    %cst_88 = arith.constant 3.200000e+01 : f32
    %178 = vector.broadcast %cst_88 : f32 to vector<16x1xf32>
    %179 = arith.divf %177, %178 : vector<16x1xf32>
    %180 = vector.broadcast %179 : vector<16x1xf32> to vector<16x32xf32>
    %181 = arith.subf %171, %180 : vector<16x32xf32>
    %182 = arith.mulf %181, %181 : vector<16x32xf32>
    %cst_89 = arith.constant dense<0.000000e+00> : vector<16xf32>
    %183 = vector.multi_reduction <add>, %182, %cst_89 [1] : vector<16x32xf32> to vector<16xf32>
    %184 = vector.shape_cast %183 : vector<16xf32> to vector<16x1xf32>
    %cst_90 = arith.constant 3.200000e+01 : f32
    %185 = vector.broadcast %cst_90 : f32 to vector<16x1xf32>
    %186 = arith.divf %184, %185 : vector<16x1xf32>
    %cst_91 = arith.constant 9.99999996E-13 : f32
    %187 = vector.broadcast %cst_91 : f32 to vector<16x1xf32>
    %188 = arith.addf %186, %187 : vector<16x1xf32>
    %189 = math.rsqrt %188 : vector<16x1xf32>
    %190 = vector.broadcast %189 : vector<16x1xf32> to vector<16x32xf32>
    %191 = arith.mulf %181, %190 : vector<16x32xf32>
    %192 = vector.broadcast %173 : vector<1x32xf32> to vector<16x32xf32>
    %193 = arith.mulf %191, %192 : vector<16x32xf32>
    %194 = vector.broadcast %175 : vector<1x32xf32> to vector<16x32xf32>
    %195 = arith.addf %193, %194 : vector<16x32xf32>
    %c1 = arith.constant 1 : index
    %c0_92 = arith.constant 0 : index
    %c0_93 = arith.constant 0 : index
    %196 = vector.load %arg4[%c1, %c0_92, %c0_93] : memref<2x32x96xf32, #tpu.memory_space<vmem>>, vector<1x32x96xf32>
    %197 = vector.shape_cast %196 : vector<1x32x96xf32> to vector<32x96xf32>
    %cst_94 = arith.constant dense<0.000000e+00> : vector<16x96xf32>
    %198 = tpu.matmul %195, %197, %cst_94 {dimension_numbers = #tpu.dot_dimension_numbers<[1], [0], [0], [1], [0, 0, 1, 1], [], []>} : vector<16x32xf32>, vector<32x96xf32>, vector<16x96xf32> -> vector<16x96xf32>
    %c1_95 = arith.constant 1 : index
    %c0_96 = arith.constant 0 : index
    %c0_97 = arith.constant 0 : index
    %199 = vector.load %arg5[%c1_95, %c0_96, %c0_97] : memref<2x1x96xf32, #tpu.memory_space<vmem>>, vector<1x1x96xf32>
    %200 = vector.shape_cast %199 : vector<1x1x96xf32> to vector<1x96xf32>
    %201 = vector.broadcast %200 : vector<1x96xf32> to vector<16x96xf32>
    %202 = arith.addf %198, %201 : vector<16x96xf32>
    %203 = vector.extract_strided_slice %202 {offsets = [0, 0], sizes = [16, 32], strides = [1, 1]} : vector<16x96xf32> to vector<16x32xf32>
    %204 = vector.extract_strided_slice %202 {offsets = [0, 32], sizes = [16, 32], strides = [1, 1]} : vector<16x96xf32> to vector<16x32xf32>
    %205 = vector.extract_strided_slice %202 {offsets = [0, 64], sizes = [16, 32], strides = [1, 1]} : vector<16x96xf32> to vector<16x32xf32>
    %206 = vector.extract_strided_slice %23 {offsets = [0, 0], sizes = [1, 8], strides = [1, 1]} : vector<2x8xf32> to vector<1x8xf32>
    %207 = vector.extract_strided_slice %203 {offsets = [0, 0], sizes = [8, 16], strides = [1, 1]} : vector<16x32xf32> to vector<8x16xf32>
    %208 = vector.extract_strided_slice %204 {offsets = [0, 0], sizes = [8, 16], strides = [1, 1]} : vector<16x32xf32> to vector<8x16xf32>
    %209 = vector.extract_strided_slice %205 {offsets = [0, 0], sizes = [8, 16], strides = [1, 1]} : vector<16x32xf32> to vector<8x16xf32>
    %cst_98 = arith.constant dense<0.000000e+00> : vector<8x8xf32>
    %210 = tpu.matmul %207, %208, %cst_98 {dimension_numbers = #tpu.dot_dimension_numbers<[1], [1], [0], [0], [0, 0, 1, 0], [], []>} : vector<8x16xf32>, vector<8x16xf32>, vector<8x8xf32> -> vector<8x8xf32>
    %cst_99 = arith.constant 2.500000e-01 : f32
    %211 = vector.broadcast %cst_99 : f32 to vector<8x8xf32>
    %212 = arith.mulf %210, %211 : vector<8x8xf32>
    %213 = vector.broadcast %206 : vector<1x8xf32> to vector<8x8xf32>
    %214 = arith.addf %212, %213 : vector<8x8xf32>
    %cst_100 = arith.constant dense<0xFF800000> : vector<8xf32>
    %215 = vector.multi_reduction <maximumf>, %214, %cst_100 [1] : vector<8x8xf32> to vector<8xf32>
    %216 = vector.shape_cast %215 : vector<8xf32> to vector<8x1xf32>
    %217 = vector.broadcast %216 : vector<8x1xf32> to vector<8x8xf32>
    %218 = arith.subf %214, %217 : vector<8x8xf32>
    %219 = math.exp %218 : vector<8x8xf32>
    %cst_101 = arith.constant dense<0.000000e+00> : vector<8xf32>
    %220 = vector.multi_reduction <add>, %219, %cst_101 [1] : vector<8x8xf32> to vector<8xf32>
    %221 = vector.shape_cast %220 : vector<8xf32> to vector<8x1xf32>
    %222 = tpu.reciprocal %221 {approx = true} : vector<8x1xf32> -> vector<8x1xf32>
    %223 = vector.broadcast %222 : vector<8x1xf32> to vector<8x8xf32>
    %224 = arith.mulf %219, %223 : vector<8x8xf32>
    %cst_102 = arith.constant dense<0.000000e+00> : vector<8x16xf32>
    %225 = tpu.matmul %224, %209, %cst_102 {dimension_numbers = #tpu.dot_dimension_numbers<[1], [0], [0], [1], [0, 0, 1, 1], [], []>} : vector<8x8xf32>, vector<8x16xf32>, vector<8x16xf32> -> vector<8x16xf32>
    %c0_103 = arith.constant 0 : index
    %c0_104 = arith.constant 0 : index
    %226 = vector.load %arg17[%c0_103, %c0_104] : memref<16x32xf32, #tpu.memory_space<vmem>>, vector<8x16xf32>
    tpu.vector_store %arg17[%c0_103, %c0_104], %225 {strides = array<i32>} : memref<16x32xf32, #tpu.memory_space<vmem>>, vector<8x16xf32>,
    %227 = vector.extract_strided_slice %203 {offsets = [0, 16], sizes = [8, 16], strides = [1, 1]} : vector<16x32xf32> to vector<8x16xf32>
    %228 = vector.extract_strided_slice %204 {offsets = [0, 16], sizes = [8, 16], strides = [1, 1]} : vector<16x32xf32> to vector<8x16xf32>
    %229 = vector.extract_strided_slice %205 {offsets = [0, 16], sizes = [8, 16], strides = [1, 1]} : vector<16x32xf32> to vector<8x16xf32>
    %cst_105 = arith.constant dense<0.000000e+00> : vector<8x8xf32>
    %230 = tpu.matmul %227, %228, %cst_105 {dimension_numbers = #tpu.dot_dimension_numbers<[1], [1], [0], [0], [0, 0, 1, 0], [], []>} : vector<8x16xf32>, vector<8x16xf32>, vector<8x8xf32> -> vector<8x8xf32>
    %cst_106 = arith.constant 2.500000e-01 : f32
    %231 = vector.broadcast %cst_106 : f32 to vector<8x8xf32>
    %232 = arith.mulf %230, %231 : vector<8x8xf32>
    %233 = vector.broadcast %206 : vector<1x8xf32> to vector<8x8xf32>
    %234 = arith.addf %232, %233 : vector<8x8xf32>
    %cst_107 = arith.constant dense<0xFF800000> : vector<8xf32>
    %235 = vector.multi_reduction <maximumf>, %234, %cst_107 [1] : vector<8x8xf32> to vector<8xf32>
    %236 = vector.shape_cast %235 : vector<8xf32> to vector<8x1xf32>
    %237 = vector.broadcast %236 : vector<8x1xf32> to vector<8x8xf32>
    %238 = arith.subf %234, %237 : vector<8x8xf32>
    %239 = math.exp %238 : vector<8x8xf32>
    %cst_108 = arith.constant dense<0.000000e+00> : vector<8xf32>
    %240 = vector.multi_reduction <add>, %239, %cst_108 [1] : vector<8x8xf32> to vector<8xf32>
    %241 = vector.shape_cast %240 : vector<8xf32> to vector<8x1xf32>
    %242 = tpu.reciprocal %241 {approx = true} : vector<8x1xf32> -> vector<8x1xf32>
    %243 = vector.broadcast %242 : vector<8x1xf32> to vector<8x8xf32>
    %244 = arith.mulf %239, %243 : vector<8x8xf32>
    %cst_109 = arith.constant dense<0.000000e+00> : vector<8x16xf32>
    %245 = tpu.matmul %244, %229, %cst_109 {dimension_numbers = #tpu.dot_dimension_numbers<[1], [0], [0], [1], [0, 0, 1, 1], [], []>} : vector<8x8xf32>, vector<8x16xf32>, vector<8x16xf32> -> vector<8x16xf32>
    %c0_110 = arith.constant 0 : index
    %c16_111 = arith.constant 16 : index
    %246 = vector.load %arg17[%c0_110, %c16_111] : memref<16x32xf32, #tpu.memory_space<vmem>>, vector<8x16xf32>
    tpu.vector_store %arg17[%c0_110, %c16_111], %245 {strides = array<i32>} : memref<16x32xf32, #tpu.memory_space<vmem>>, vector<8x16xf32>,
    %247 = vector.extract_strided_slice %23 {offsets = [1, 0], sizes = [1, 8], strides = [1, 1]} : vector<2x8xf32> to vector<1x8xf32>
    %248 = vector.extract_strided_slice %203 {offsets = [8, 0], sizes = [8, 16], strides = [1, 1]} : vector<16x32xf32> to vector<8x16xf32>
    %249 = vector.extract_strided_slice %204 {offsets = [8, 0], sizes = [8, 16], strides = [1, 1]} : vector<16x32xf32> to vector<8x16xf32>
    %250 = vector.extract_strided_slice %205 {offsets = [8, 0], sizes = [8, 16], strides = [1, 1]} : vector<16x32xf32> to vector<8x16xf32>
    %cst_112 = arith.constant dense<0.000000e+00> : vector<8x8xf32>
    %251 = tpu.matmul %248, %249, %cst_112 {dimension_numbers = #tpu.dot_dimension_numbers<[1], [1], [0], [0], [0, 0, 1, 0], [], []>} : vector<8x16xf32>, vector<8x16xf32>, vector<8x8xf32> -> vector<8x8xf32>
    %cst_113 = arith.constant 2.500000e-01 : f32
    %252 = vector.broadcast %cst_113 : f32 to vector<8x8xf32>
    %253 = arith.mulf %251, %252 : vector<8x8xf32>
    %254 = vector.broadcast %247 : vector<1x8xf32> to vector<8x8xf32>
    %255 = arith.addf %253, %254 : vector<8x8xf32>
    %cst_114 = arith.constant dense<0xFF800000> : vector<8xf32>
    %256 = vector.multi_reduction <maximumf>, %255, %cst_114 [1] : vector<8x8xf32> to vector<8xf32>
    %257 = vector.shape_cast %256 : vector<8xf32> to vector<8x1xf32>
    %258 = vector.broadcast %257 : vector<8x1xf32> to vector<8x8xf32>
    %259 = arith.subf %255, %258 : vector<8x8xf32>
    %260 = math.exp %259 : vector<8x8xf32>
    %cst_115 = arith.constant dense<0.000000e+00> : vector<8xf32>
    %261 = vector.multi_reduction <add>, %260, %cst_115 [1] : vector<8x8xf32> to vector<8xf32>
    %262 = vector.shape_cast %261 : vector<8xf32> to vector<8x1xf32>
    %263 = tpu.reciprocal %262 {approx = true} : vector<8x1xf32> -> vector<8x1xf32>
    %264 = vector.broadcast %263 : vector<8x1xf32> to vector<8x8xf32>
    %265 = arith.mulf %260, %264 : vector<8x8xf32>
    %cst_116 = arith.constant dense<0.000000e+00> : vector<8x16xf32>
    %266 = tpu.matmul %265, %250, %cst_116 {dimension_numbers = #tpu.dot_dimension_numbers<[1], [0], [0], [1], [0, 0, 1, 1], [], []>} : vector<8x8xf32>, vector<8x16xf32>, vector<8x16xf32> -> vector<8x16xf32>
    %c8_117 = arith.constant 8 : index
    %c0_118 = arith.constant 0 : index
    %267 = vector.load %arg17[%c8_117, %c0_118] : memref<16x32xf32, #tpu.memory_space<vmem>>, vector<8x16xf32>
    tpu.vector_store %arg17[%c8_117, %c0_118], %266 {strides = array<i32>} : memref<16x32xf32, #tpu.memory_space<vmem>>, vector<8x16xf32>,
    %268 = vector.extract_strided_slice %203 {offsets = [8, 16], sizes = [8, 16], strides = [1, 1]} : vector<16x32xf32> to vector<8x16xf32>
    %269 = vector.extract_strided_slice %204 {offsets = [8, 16], sizes = [8, 16], strides = [1, 1]} : vector<16x32xf32> to vector<8x16xf32>
    %270 = vector.extract_strided_slice %205 {offsets = [8, 16], sizes = [8, 16], strides = [1, 1]} : vector<16x32xf32> to vector<8x16xf32>
    %cst_119 = arith.constant dense<0.000000e+00> : vector<8x8xf32>
    %271 = tpu.matmul %268, %269, %cst_119 {dimension_numbers = #tpu.dot_dimension_numbers<[1], [1], [0], [0], [0, 0, 1, 0], [], []>} : vector<8x16xf32>, vector<8x16xf32>, vector<8x8xf32> -> vector<8x8xf32>
    %cst_120 = arith.constant 2.500000e-01 : f32
    %272 = vector.broadcast %cst_120 : f32 to vector<8x8xf32>
    %273 = arith.mulf %271, %272 : vector<8x8xf32>
    %274 = vector.broadcast %247 : vector<1x8xf32> to vector<8x8xf32>
    %275 = arith.addf %273, %274 : vector<8x8xf32>
    %cst_121 = arith.constant dense<0xFF800000> : vector<8xf32>
    %276 = vector.multi_reduction <maximumf>, %275, %cst_121 [1] : vector<8x8xf32> to vector<8xf32>
    %277 = vector.shape_cast %276 : vector<8xf32> to vector<8x1xf32>
    %278 = vector.broadcast %277 : vector<8x1xf32> to vector<8x8xf32>
    %279 = arith.subf %275, %278 : vector<8x8xf32>
    %280 = math.exp %279 : vector<8x8xf32>
    %cst_122 = arith.constant dense<0.000000e+00> : vector<8xf32>
    %281 = vector.multi_reduction <add>, %280, %cst_122 [1] : vector<8x8xf32> to vector<8xf32>
    %282 = vector.shape_cast %281 : vector<8xf32> to vector<8x1xf32>
    %283 = tpu.reciprocal %282 {approx = true} : vector<8x1xf32> -> vector<8x1xf32>
    %284 = vector.broadcast %283 : vector<8x1xf32> to vector<8x8xf32>
    %285 = arith.mulf %280, %284 : vector<8x8xf32>
    %cst_123 = arith.constant dense<0.000000e+00> : vector<8x16xf32>
    %286 = tpu.matmul %285, %270, %cst_123 {dimension_numbers = #tpu.dot_dimension_numbers<[1], [0], [0], [1], [0, 0, 1, 1], [], []>} : vector<8x8xf32>, vector<8x16xf32>, vector<8x16xf32> -> vector<8x16xf32>
    %c8_124 = arith.constant 8 : index
    %c16_125 = arith.constant 16 : index
    %287 = vector.load %arg17[%c8_124, %c16_125] : memref<16x32xf32, #tpu.memory_space<vmem>>, vector<8x16xf32>
    tpu.vector_store %arg17[%c8_124, %c16_125], %286 {strides = array<i32>} : memref<16x32xf32, #tpu.memory_space<vmem>>, vector<8x16xf32>,
    %c0_126 = arith.constant 0 : index
    %c0_127 = arith.constant 0 : index
    %288 = vector.load %arg17[%c0_126, %c0_127] : memref<16x32xf32, #tpu.memory_space<vmem>>, vector<16x32xf32>
    %c1_128 = arith.constant 1 : index
    %c0_129 = arith.constant 0 : index
    %c0_130 = arith.constant 0 : index
    %289 = vector.load %arg6[%c1_128, %c0_129, %c0_130] : memref<2x32x32xf32, #tpu.memory_space<vmem>>, vector<1x32x32xf32>
    %290 = vector.shape_cast %289 : vector<1x32x32xf32> to vector<32x32xf32>
    %cst_131 = arith.constant dense<0.000000e+00> : vector<16x32xf32>
    %291 = tpu.matmul %288, %290, %cst_131 {dimension_numbers = #tpu.dot_dimension_numbers<[1], [0], [0], [1], [0, 0, 1, 1], [], []>} : vector<16x32xf32>, vector<32x32xf32>, vector<16x32xf32> -> vector<16x32xf32>
    %c1_132 = arith.constant 1 : index
    %c0_133 = arith.constant 0 : index
    %c0_134 = arith.constant 0 : index
    %292 = vector.load %arg7[%c1_132, %c0_133, %c0_134] : memref<2x1x32xf32, #tpu.memory_space<vmem>>, vector<1x1x32xf32>
    %293 = vector.shape_cast %292 : vector<1x1x32xf32> to vector<1x32xf32>
    %294 = vector.broadcast %293 : vector<1x32xf32> to vector<16x32xf32>
    %295 = arith.addf %291, %294 : vector<16x32xf32>
    %296 = arith.addf %195, %295 : vector<16x32xf32>
    %c1_135 = arith.constant 1 : index
    %c0_136 = arith.constant 0 : index
    %c0_137 = arith.constant 0 : index
    %297 = vector.load %arg8[%c1_135, %c0_136, %c0_137] : memref<2x1x32xf32, #tpu.memory_space<vmem>>, vector<1x1x32xf32>
    %298 = vector.shape_cast %297 : vector<1x1x32xf32> to vector<1x32xf32>
    %c1_138 = arith.constant 1 : index
    %c0_139 = arith.constant 0 : index
    %c0_140 = arith.constant 0 : index
    %299 = vector.load %arg9[%c1_138, %c0_139, %c0_140] : memref<2x1x32xf32, #tpu.memory_space<vmem>>, vector<1x1x32xf32>
    %300 = vector.shape_cast %299 : vector<1x1x32xf32> to vector<1x32xf32>
    %cst_141 = arith.constant dense<0.000000e+00> : vector<16xf32>
    %301 = vector.multi_reduction <add>, %296, %cst_141 [1] : vector<16x32xf32> to vector<16xf32>
    %302 = vector.shape_cast %301 : vector<16xf32> to vector<16x1xf32>
    %cst_142 = arith.constant 3.200000e+01 : f32
    %303 = vector.broadcast %cst_142 : f32 to vector<16x1xf32>
    %304 = arith.divf %302, %303 : vector<16x1xf32>
    %305 = vector.broadcast %304 : vector<16x1xf32> to vector<16x32xf32>
    %306 = arith.subf %296, %305 : vector<16x32xf32>
    %307 = arith.mulf %306, %306 : vector<16x32xf32>
    %cst_143 = arith.constant dense<0.000000e+00> : vector<16xf32>
    %308 = vector.multi_reduction <add>, %307, %cst_143 [1] : vector<16x32xf32> to vector<16xf32>
    %309 = vector.shape_cast %308 : vector<16xf32> to vector<16x1xf32>
    %cst_144 = arith.constant 3.200000e+01 : f32
    %310 = vector.broadcast %cst_144 : f32 to vector<16x1xf32>
    %311 = arith.divf %309, %310 : vector<16x1xf32>
    %cst_145 = arith.constant 9.99999996E-13 : f32
    %312 = vector.broadcast %cst_145 : f32 to vector<16x1xf32>
    %313 = arith.addf %311, %312 : vector<16x1xf32>
    %314 = math.rsqrt %313 : vector<16x1xf32>
    %315 = vector.broadcast %314 : vector<16x1xf32> to vector<16x32xf32>
    %316 = arith.mulf %306, %315 : vector<16x32xf32>
    %317 = vector.broadcast %298 : vector<1x32xf32> to vector<16x32xf32>
    %318 = arith.mulf %316, %317 : vector<16x32xf32>
    %319 = vector.broadcast %300 : vector<1x32xf32> to vector<16x32xf32>
    %320 = arith.addf %318, %319 : vector<16x32xf32>
    %c1_146 = arith.constant 1 : index
    %c0_147 = arith.constant 0 : index
    %c0_148 = arith.constant 0 : index
    %321 = vector.load %arg10[%c1_146, %c0_147, %c0_148] : memref<2x32x64xf32, #tpu.memory_space<vmem>>, vector<1x32x64xf32>
    %322 = vector.shape_cast %321 : vector<1x32x64xf32> to vector<32x64xf32>
    %cst_149 = arith.constant dense<0.000000e+00> : vector<16x64xf32>
    %323 = tpu.matmul %320, %322, %cst_149 {dimension_numbers = #tpu.dot_dimension_numbers<[1], [0], [0], [1], [0, 0, 1, 1], [], []>} : vector<16x32xf32>, vector<32x64xf32>, vector<16x64xf32> -> vector<16x64xf32>
    %c1_150 = arith.constant 1 : index
    %c0_151 = arith.constant 0 : index
    %c0_152 = arith.constant 0 : index
    %324 = vector.load %arg11[%c1_150, %c0_151, %c0_152] : memref<2x1x64xf32, #tpu.memory_space<vmem>>, vector<1x1x64xf32>
    %325 = vector.shape_cast %324 : vector<1x1x64xf32> to vector<1x64xf32>
    %326 = vector.broadcast %325 : vector<1x64xf32> to vector<16x64xf32>
    %327 = arith.addf %323, %326 : vector<16x64xf32>
    %cst_153 = arith.constant 5.000000e-01 : f32
    %328 = vector.broadcast %cst_153 : f32 to vector<16x64xf32>
    %329 = arith.mulf %328, %327 : vector<16x64xf32>
    %cst_154 = arith.constant 0.707106769 : f32
    %330 = vector.broadcast %cst_154 : f32 to vector<16x64xf32>
    %331 = arith.mulf %327, %330 : vector<16x64xf32>
    %332 = math.erf %331 : vector<16x64xf32>
    %cst_155 = arith.constant 1.000000e+00 : f32
    %333 = vector.broadcast %cst_155 : f32 to vector<16x64xf32>
    %334 = arith.addf %333, %332 : vector<16x64xf32>
    %335 = arith.mulf %329, %334 : vector<16x64xf32>
    %c1_156 = arith.constant 1 : index
    %c0_157 = arith.constant 0 : index
    %c0_158 = arith.constant 0 : index
    %336 = vector.load %arg12[%c1_156, %c0_157, %c0_158] : memref<2x64x32xf32, #tpu.memory_space<vmem>>, vector<1x64x32xf32>
    %337 = vector.shape_cast %336 : vector<1x64x32xf32> to vector<64x32xf32>
    %cst_159 = arith.constant dense<0.000000e+00> : vector<16x32xf32>
    %338 = tpu.matmul %335, %337, %cst_159 {dimension_numbers = #tpu.dot_dimension_numbers<[1], [0], [0], [1], [0, 0, 1, 1], [], []>} : vector<16x64xf32>, vector<64x32xf32>, vector<16x32xf32> -> vector<16x32xf32>
    %c1_160 = arith.constant 1 : index
    %c0_161 = arith.constant 0 : index
    %c0_162 = arith.constant 0 : index
    %339 = vector.load %arg13[%c1_160, %c0_161, %c0_162] : memref<2x1x32xf32, #tpu.memory_space<vmem>>, vector<1x1x32xf32>
    %340 = vector.shape_cast %339 : vector<1x1x32xf32> to vector<1x32xf32>
    %341 = vector.broadcast %340 : vector<1x32xf32> to vector<16x32xf32>
    %342 = arith.addf %338, %341 : vector<16x32xf32>
    %343 = arith.addf %320, %342 : vector<16x32xf32>
    %c1_163 = arith.constant 1 : index
    %c0_164 = arith.constant 0 : index
    %c0_165 = arith.constant 0 : index
    %344 = vector.load %arg14[%c1_163, %c0_164, %c0_165] : memref<2x1x32xf32, #tpu.memory_space<vmem>>, vector<1x1x32xf32>
    %345 = vector.shape_cast %344 : vector<1x1x32xf32> to vector<1x32xf32>
    %c1_166 = arith.constant 1 : index
    %c0_167 = arith.constant 0 : index
    %c0_168 = arith.constant 0 : index
    %346 = vector.load %arg15[%c1_166, %c0_167, %c0_168] : memref<2x1x32xf32, #tpu.memory_space<vmem>>, vector<1x1x32xf32>
    %347 = vector.shape_cast %346 : vector<1x1x32xf32> to vector<1x32xf32>
    %cst_169 = arith.constant dense<0.000000e+00> : vector<16xf32>
    %348 = vector.multi_reduction <add>, %343, %cst_169 [1] : vector<16x32xf32> to vector<16xf32>
    %349 = vector.shape_cast %348 : vector<16xf32> to vector<16x1xf32>
    %cst_170 = arith.constant 3.200000e+01 : f32
    %350 = vector.broadcast %cst_170 : f32 to vector<16x1xf32>
    %351 = arith.divf %349, %350 : vector<16x1xf32>
    %352 = vector.broadcast %351 : vector<16x1xf32> to vector<16x32xf32>
    %353 = arith.subf %343, %352 : vector<16x32xf32>
    %354 = arith.mulf %353, %353 : vector<16x32xf32>
    %cst_171 = arith.constant dense<0.000000e+00> : vector<16xf32>
    %355 = vector.multi_reduction <add>, %354, %cst_171 [1] : vector<16x32xf32> to vector<16xf32>
    %356 = vector.shape_cast %355 : vector<16xf32> to vector<16x1xf32>
    %cst_172 = arith.constant 3.200000e+01 : f32
    %357 = vector.broadcast %cst_172 : f32 to vector<16x1xf32>
    %358 = arith.divf %356, %357 : vector<16x1xf32>
    %cst_173 = arith.constant 9.99999996E-13 : f32
    %359 = vector.broadcast %cst_173 : f32 to vector<16x1xf32>
    %360 = arith.addf %358, %359 : vector<16x1xf32>
    %361 = math.rsqrt %360 : vector<16x1xf32>
    %362 = vector.broadcast %361 : vector<16x1xf32> to vector<16x32xf32>
    %363 = arith.mulf %353, %362 : vector<16x32xf32>
    %364 = vector.broadcast %345 : vector<1x32xf32> to vector<16x32xf32>
    %365 = arith.mulf %363, %364 : vector<16x32xf32>
    %366 = vector.broadcast %347 : vector<1x32xf32> to vector<16x32xf32>
    %367 = arith.addf %365, %366 : vector<16x32xf32>
    %368 = vector.shape_cast %367 : vector<16x32xf32> to vector<2x8x32xf32>
    %c0_174 = arith.constant 0 : index
    %c0_175 = arith.constant 0 : index
    %c0_176 = arith.constant 0 : index
    %369 = vector.load %arg16[%c0_174, %c0_175, %c0_176] : memref<2x8x32xf32, #tpu.memory_space<vmem>>, vector<2x8x32xf32>
    tpu.vector_store %arg16[%c0_174, %c0_175, %c0_176], %368 {strides = array<i32>} : memref<2x8x32xf32, #tpu.memory_space<vmem>>, vector<2x8x32xf32>,
    return
  }
}

</mosaic_0001>

<bundles_post_ra>
// kernel: tpu_custom_call.1
= control target key start
LH: loop header
LB: loop body
LE: loop exit
PB: predicated region body
PF: predicated region fallthrough
CT: control target
= control target key end

     0   :  { %s3647_s0 = inlined_call_operand.hbm [shape: f32[16,32], index: 0, kind: input, shape index: {}]   ;;  %s3648_s1 = inlined_call_operand.vmem [shape: f32[2,8], index: 1, kind: input, shape index: {}]   ;;  %s3649_s2 = inlined_call_operand.hbm [shape: f32[1,32], index: 2, kind: input, shape index: {}]   ;;  %s3650_s3 = inlined_call_operand.hbm [shape: f32[1,32], index: 3, kind: input, shape index: {}]   ;;  %s3651_s4 = inlined_call_operand.vmem [shape: f32[2,32,96], index: 4, kind: input, shape index: {}]   ;;  %s3652_s5 = inlined_call_operand.vmem [shape: f32[2,1,96], index: 5, kind: input, shape index: {}]   ;;  %s3653_s6 = inlined_call_operand.vmem [shape: f32[2,32,32], index: 6, kind: input, shape index: {}]   ;;  %s3654_s7 = inlined_call_operand.vmem [shape: f32[2,1,32], index: 7, kind: input, shape index: {}]   ;;  %s3655_s8 = inlined_call_operand.vmem [shape: f32[2,1,32], index: 8, kind: input, shape index: {}]   ;;  %s3656_s9 = inlined_call_operand.vmem [shape: f32[2,1,32], index: 9, kind: input, shape index: {}]   ;;  %s3657_s10 = inlined_call_operand.vmem [shape: f32[2,32,64], index: 10, kind: input, shape index: {}]   ;;  %s3658_s11 = inlined_call_operand.vmem [shape: f32[2,1,64], index: 11, kind: input, shape index: {}]   ;;  %s3659_s12 = inlined_call_operand.vmem [shape: f32[2,64,32], index: 12, kind: input, shape index: {}]   ;;  %s3660_s13 = inlined_call_operand.vmem [shape: f32[2,1,32], index: 13, kind: input, shape index: {}]   ;;  %s3661_s14 = inlined_call_operand.vmem [shape: f32[2,1,32], index: 14, kind: input, shape index: {}]   ;;  %s3662_s15 = inlined_call_operand.vmem [shape: f32[2,1,32], index: 15, kind: input, shape index: {}]   ;;  %s3663_s16 = inlined_call_operand.hbm [shape: f32[2,8,32], index: 16, kind: output, shape index: {}]  }
   0x1   :  { %3665 = sst [smem:[#allocation13_spill]] %s3647_s0 }
   0x2   :  { %21 = vsyncpa [#allocation4], 0 }
   0x3   :  { %22 = vsyncpa [#allocation7], 0 }
   0x4   :  { %23 = vsyncpa [#allocation5], 0  ;;  %s3098_s21 = smov [#allocation6]   ;;  %s3099_s23 = smov [#allocation3]  }
   0x5   :  { %s44_s22 = sshll.u32 %s3098_s21, 4  ;;  %s29_s24 = sshll.u32 %s3099_s23, 4  ;;  %s45_s22 = int_to_ptr.vmem [resolvable:$true] %s44_s22  ;;  %s3197_s24 = int_to_ptr.vmem [resolvable:$true] %s29_s24 }
   0x6   :  { %s3004_s27 = scalar_lea.hbm %s3649_s2, 16 }
   0x7   :  { %p3005_p0 = scmp.ne.s32.totalorder %s3649_s2, %s3004_s27  ;;  %p3008_p1 = scmp.lt.u32.totalorder %s3004_s27, %s3649_s2 }
   0x9   :  { %p3010_p2 = pnand %p3008_p1, %p3005_p0 }
   0xb   :  { %3013 = shalt.err (!%p3010_p2)
}
   0xc   :  { %s3014_s17 = scalar_lea.vmem %s45_s22, 16  ;;  %s3018_s18 = scalar_lea.vmem %s45_s22, 32 }
   0xd   :  { %p3015_p3 = scmp.ne.s32.totalorder %s45_s22, %s3014_s17  ;;  %p3019_p4 = scmp.lt.s32.totalorder %s45_s22, %s45_s22 }
   0xe   :  { %p3020_p5 = scmp.lt.s32.totalorder %s3018_s18, %s3014_s17 }
  0x10   :  { %p3021_p6 = por %p3020_p5, %p3019_p4 }
  0x12   :  { %p3022_p7 = pnand %p3021_p6, %p3015_p3 }
  0x14   :  { %3025 = shalt.err (!%p3022_p7)
}
  0x15   :  { %47 = dma.hbm_to_vmem [thread:$0]  %s3649_s2, 16, %s45_s22, [#allocation7]  }
  0x16   :  { %s3666_s25 = sld [smem:[#allocation13_spill]] }
  0x1c   :  { %s3026_s26 = scalar_lea.hbm %s3666_s25, 256 }
  0x1d   :  { %p3027_p8 = scmp.ne.s32.totalorder %s3666_s25, %s3026_s26  ;;  %p3030_p9 = scmp.lt.u32.totalorder %s3026_s26, %s3666_s25 }
  0x1f   :  { %p3032_p10 = pnand %p3030_p9, %p3027_p8 }
  0x21   :  { %3035 = shalt.err (!%p3032_p10)
}
  0x22   :  { %s3036_s0 = scalar_lea.vmem %s3197_s24, 256  ;;  %p3041_p12 = scmp.lt.s32.totalorder %s3197_s24, %s3197_s24 }
  0x23   :  { %p3037_p11 = scmp.ne.s32.totalorder %s3197_s24, %s3036_s0  ;;  %p3042_p13 = scmp.lt.s32.totalorder %s3036_s0, %s3036_s0 }
  0x25   :  { %p3043_p0 = por %p3042_p13, %p3041_p12 }
  0x27   :  { %p3044_p1 = pnand %p3043_p0, %p3037_p11 }
  0x29   :  { %3047 = shalt.err (!%p3044_p1)
}
  0x2a   :  { %s3100_s2 = smov 128   ;;  %s3101_s22 = smov 8  }
  0x2b   :  { %35 = dma.hbm_to_vmem [thread:$0]  %s3666_s25, 256, %s3197_s24, [#allocation4], %s3100_s2, %s3100_s2, %s3101_s22  }
  0x2c   :  { %s3102_s19 = smov [#allocation8]   ;;  %s3048_s26 = scalar_lea.hbm %s3650_s3, 16 }
  0x2d   :  { %s54_s20 = sshll.u32 %s3102_s19, 4  ;;  %p3049_p2 = scmp.ne.s32.totalorder %s3650_s3, %s3048_s26  ;;  %s55_s20 = int_to_ptr.vmem [resolvable:$true] %s54_s20 }
  0x2e   :  { %p3052_p3 = scmp.lt.u32.totalorder %s3048_s26, %s3650_s3 }
  0x30   :  { %p3054_p4 = pnand %p3052_p3, %p3049_p2 }
  0x32   :  { %3057 = shalt.err (!%p3054_p4)
}
  0x33   :  { %s3058_s0 = scalar_lea.vmem %s55_s20, 16  ;;  %s3062_s24 = scalar_lea.vmem %s55_s20, 32 }
  0x34   :  { %p3059_p5 = scmp.ne.s32.totalorder %s55_s20, %s3058_s0  ;;  %p3063_p6 = scmp.lt.s32.totalorder %s55_s20, %s55_s20 }
  0x35   :  { %p3064_p7 = scmp.lt.s32.totalorder %s3062_s24, %s3058_s0 }
  0x37   :  { %p3065_p8 = por %p3064_p7, %p3063_p6 }
  0x39   :  { %p3066_p9 = pnand %p3065_p8, %p3059_p5 }
  0x3b   :  { %3069 = shalt.err (!%p3066_p9)
}
  0x3c   :  { %57 = dma.hbm_to_vmem [thread:$0]  %s3650_s3, 16, %s55_s20, [#allocation7]  }
  0x3d   :  { %3092 = dma.done.wait [#allocation4], 256  }
  0x3e   :  { %3093 = vsyncadd [#allocation4], 4294967040 }
  0x3f   :  { %3094 = dma.done.wait [#allocation7], 32  }
  0x40   :  { %3095 = vsyncadd [#allocation7], 4294967264  ;;  %vm95_vm0 = vcmask 261120   ;;  %v91_v0 = vld [vmem:[#allocation3] sm:$0xff]  ;;  %v92_v1 = vld [vmem:[#allocation3 + $0x8] sm:$0xff]  ;;  %v3103_v36 = vmov 0.0   ;;  %v311_v48 = vlaneseq }
  0x41   :  { %v96_v2 = vsel %vm95_vm0, %v91_v0, 0.0  ;;  %v99_v3 = vsel %vm95_vm0, %v92_v1, 0.0  ;;  %v140_v14 = vld [vmem:[%s3651_s4] sm:$0xff]  ;;  %v141_v15 = vld [vmem:[%s3651_s4 + $0x8] sm:$0xff]  ;;  %v142_v16 = vld [vmem:[%s3651_s4 + $0x10] sm:$0xff]  ;;  %2687 = vmatprep.subr.mxu0 %v3103_v36  ;;  %vm3104_vm1 = vmmov 0  }
  0x42   :  { %97 = vadd.xlane.f32.xlu0 %v96_v2  ;;  %v2850_v17 = vpack.c.bf16 %v141_v15, %v140_v14  ;;  %v143_v18 = vld [vmem:[%s3651_s4 + $0x18] sm:$0xff]  ;;  %v2492_v27 = vld [vmem:[#allocation6] ss:$0 sm:$0xff]  ;;  %v2493_v29 = vld [vmem:[#allocation8] ss:$0 sm:$0xff]  ;;  %2689 = vmatprep.mubr.msk.f32.mxu0 %vm3104_vm1, %v3103_v36  ;;  %s3105_s30 = smov 80  }
  0x43   :  { %v2854_v19 = vpack.c.bf16 %v143_v18, %v142_v16  ;;  %v2494_v37 = vld [vmem:[%s3652_s5] ss:$0 sm:$0xff]  ;;  %s3106_s0 = smov 96   ;;  %s3107_s24 = smov 112   ;;  %vm235_vm2 = vcmask 130048   ;;  %v312_v49 = vshrl.u32 %v311_v48, 7 }
  0x44   :  { %2851 = vmatprep.subr.bf16.mxu1 %v2850_v17  ;;  %v139_v51 = vld [vmem:[%s3648_s1] sm:$0x3]  ;;  %vm316_vm3 = vcmask 64512   ;;  %s3108_s1 = smov 48   ;;  %s3109_s3 = smov 64   ;;  %vm576_vm4 = vcmask 261248  }
  0x45   :  { %2853 = vmatpush3.bf16.msra.mxu1 %v2850_v17  ;;  %v313_v50 = vsub.s32 0, %v312_v49  ;;  %v658_v60 = vsub.s32 1, %v312_v49  ;;  %s3110_s18 = smov 16   ;;  %vm1178_vm5 = vcmask 523264  }
  0x46   :  { %100 = vadd.xlane.f32.xlu0 %v99_v3  ;;  %2855 = vmatprep.subr.bf16.mxu1 %v2854_v19 }
  0x47   :  { %v3314_v52 = vrot.slane %v139_v51, %v313_v50 }
  0x49   :  { %2857 = vmatpush3.bf16.msra.mxu1 %v2854_v19 }
  0x4a   :  { %2677 = vmatprep.subr.mxu1 %v3103_v36 }
  0xcf   :  { %v98_v4 = vpop.xlane.xlu0 %97 }
  0xd0   :  { %v103_v5 = vmul.f32 0.03125, %v98_v4 }
  0xd2   :  { %v105_v6 = vsub.f32 %v91_v0, %v103_v5  ;;  %v3320_v0 = vrot.slane %v139_v51, %v658_v60  ;;  %v925_v60 = vld [vmem:[%s3653_s6 + $0x10] sm:$0xff] }
  0xd3   :  { %v101_v7 = vpop.xlane.xlu0 %100 }
  0xd4   :  { %v104_v8 = vmul.f32 0.03125, %v101_v7  ;;  %v107_v9 = vmul.f32 %v105_v6, %v105_v6 }
  0xd6   :  { %v106_v10 = vsub.f32 %v92_v1, %v104_v8  ;;  %v109_v11 = vsel %vm95_vm0, %v107_v9, 0.0 }
  0xd7   :  { %110 = vadd.xlane.f32.xlu1 %v109_v11 }
  0xd8   :  { %v108_v12 = vmul.f32 %v106_v10, %v106_v10 }
  0xda   :  { %v112_v13 = vsel %vm95_vm0, %v108_v12, 0.0 }
  0xdb   :  { %113 = vadd.xlane.f32.xlu1 %v112_v13 }
 0x164   :  { %v111_v20 = vpop.xlane.xlu1 %110 }
 0x165   :  { %v115_v21 = vmul.f32 0.03125, %v111_v20 }
 0x167   :  { %v117_v22 = vadd.f32 1e-12, %v115_v21 }
 0x168   :  { %v114_v23 = vpop.xlane.xlu1 %113 }
 0x169   :  { %2944 = vrsqrt.f32 %v117_v22  ;;  %v116_v24 = vmul.f32 0.03125, %v114_v23 }
 0x16b   :  { %v118_v25 = vadd.f32 1e-12, %v116_v24 }
 0x16d   :  { %2946 = vrsqrt.f32 %v118_v25 }
 0x173   :  { %v2945_v26 = vpop.eup %2944 }
 0x174   :  { %v121_v28 = vmul.f32 %v2945_v26, %v105_v6 }
 0x176   :  { %v129_v30 = vmul.f32 %v2492_v27, %v121_v28 }
 0x177   :  { %v2947_v31 = vpop.eup %2946 }
 0x178   :  { %v122_v32 = vmul.f32 %v2947_v31, %v106_v10  ;;  %v3259_v33 = vadd.f32 %v2493_v29, %v129_v30 }
 0x17a   :  { %v130_v34 = vmul.f32 %v2492_v27, %v122_v32  ;;  %2674 = vmatprep.mubr.msk.f32.mxu1 %vm95_vm0, %v3259_v33 }
 0x17c   :  { %v3263_v35 = vadd.f32 %v2493_v29, %v130_v34 }
 0x17e   :  { %2675 = vmatmul.mubr.msk.f32.vlgmr.msra.gmra.mrb[0].mxu1 %vm95_vm0, %v3263_v35 }
 0x17f   :  { %2679 = vmatprep.mubr.msk.f32.mxu1 %vm3104_vm1, %v3103_v36 }
 0x251   :  { %v2676_v38 = vpop.f32.mrb[0].mxu1 }
 0x252   :  { %v223_v39 = vpop.f32.mrb[1].mxu1  ;;  %v3282_v41 = vadd.f32 %v2676_v38, %v2494_v37 }
 0x253   :  { %v3276_v40 = vadd.f32 %v2494_v37, %v223_v39 }
 0x255   :  { %407 = vrot.lane.b32.xlu1 %v3276_v40, %s3105_s30  ;;  %233 = vrot.lane.b32.xlu0 %v3276_v40, %s3106_s0 }
 0x259   :  { %405 = vrot.lane.b32.xlu1 %v3276_v40, %s3107_s24  ;;  %751 = vrot.lane.b32.xlu0 %v3282_v41, %s3105_s30 }
 0x25d   :  { %579 = vrot.lane.b32.xlu1 %v3282_v41, %s3106_s0 }
 0x261   :  { %749 = vrot.lane.b32.xlu1 %v3282_v41, %s3107_s24 }
 0x2c7   :  { %v408_v42 = vpop.permute.xlu1 %407  ;;  %v234_v43 = vpop.permute.xlu0 %233 }
 0x2c8   :  { %2678 = vmatpush3.xpose.msk.msra.mxu1 %vm235_vm2, %v234_v43  ;;  %2688 = vmatpush3.xpose.msk.msra.mxu0 %vm235_vm2, %v408_v42 }
 0x2c9   :  { %2697 = vmatprep.subr.mxu0 %v3103_v36  ;;  %2682 = vmatprep.subr.mxu1 %v3103_v36 }
 0x2cb   :  { %v406_v44 = vpop.permute.xlu1 %405  ;;  %2680 = vmatmul.mubr.msk.f32.vlgmr.msra.gmra.mrb[2].mxu1 %vm235_vm2, %v3276_v40  ;;  %v752_v46 = vpop.permute.xlu0 %751 }
 0x2cc   :  { %2690 = vmatmul.mubr.msk.f32.vlgmr.msra.gmra.mrb[0].mxu0 %vm235_vm2, %v406_v44  ;;  %2684 = vmatprep.mubr.msk.f32.mxu1 %vm3104_vm1, %v3103_v36 }
 0x2cd   :  { %2699 = vmatprep.mubr.msk.f32.mxu0 %vm3104_vm1, %v3103_v36 }
 0x2cf   :  { %v580_v45 = vpop.permute.xlu1 %579 }
 0x2d0   :  { %2698 = vmatpush3.xpose.msk.msra.mxu0 %vm235_vm2, %v580_v45 }
 0x2d1   :  { %2707 = vmatprep.subr.mxu0 %v3103_v36 }
 0x2d3   :  { %2700 = vmatmul.mubr.msk.f32.vlgmr.msra.gmra.mrb[2].mxu0 %vm235_vm2, %v3282_v41  ;;  %v750_v47 = vpop.permute.xlu1 %749 }
 0x2d4   :  { %2708 = vmatpush3.xpose.msk.msra.mxu0 %vm235_vm2, %v752_v46  ;;  %2709 = vmatprep.mubr.msk.f32.mxu0 %vm3104_vm1, %v3103_v36 }
 0x2d7   :  { %2710 = vmatmul.mubr.msk.f32.vlgmr.msra.gmra.mrb[4].mxu0 %vm235_vm2, %v750_v47 }
 0x39e   :  { %v306_v53 = vpop.f32.mrb[2].mxu1 }
 0x39f   :  { %v310_v54 = vmul.f32 0.25, %v306_v53  ;;  %v2681_v55 = vpop.f32.mrb[3].mxu1  ;;  %v479_v56 = vpop.f32.mrb[0].mxu0 }
 0x3a0   :  { %v483_v57 = vmul.f32 0.25, %v479_v56  ;;  %v2691_v58 = vpop.f32.mrb[1].mxu0 }
 0x3a1   :  { %v315_v59 = vadd.f32 %v3314_v52, %v310_v54  ;;  %v924_v58 = vld [vmem:[%s3653_s6 + $0x8] sm:$0xff] }
 0x3a2   :  { %v484_v61 = vadd.f32 %v483_v57, %v3314_v52  ;;  %v923_v57 = vld [vmem:[%s3653_s6] sm:$0xff] }
 0x3a3   :  { %v317_v62 = vsel %vm316_vm3, %v315_v59, -inf }
 0x3a4   :  { %318 = vmax.xlane.f32.xlu0 %v317_v62  ;;  %v485_v63 = vsel %vm316_vm3, %v484_v61, -inf }
 0x3a5   :  { %486 = vmax.xlane.f32.xlu1 %v485_v63 }
 0x3a6   :  { %v651_v1 = vpop.f32.mrb[2].mxu0 }
 0x3a7   :  { %v655_v2 = vmul.f32 0.25, %v651_v1  ;;  %v2701_v3 = vpop.f32.mrb[3].mxu0 }
 0x3a9   :  { %v660_v4 = vadd.f32 %v3320_v0, %v655_v2 }
 0x3aa   :  { %v823_v5 = vpop.f32.mrb[4].mxu0 }
 0x3ab   :  { %v827_v6 = vmul.f32 0.25, %v823_v5  ;;  %v2711_v7 = vpop.f32.mrb[5].mxu0  ;;  %v661_v8 = vsel %vm316_vm3, %v660_v4, -inf }
 0x3ac   :  { %662 = vmax.xlane.f32.xlu0 %v661_v8 }
 0x3ad   :  { %v828_v9 = vadd.f32 %v827_v6, %v3320_v0  ;;  %v2509_v6 = vld [vmem:[%s3654_s7] ss:$0 sm:$0xff] }
 0x3af   :  { %v829_v10 = vsel %vm316_vm3, %v828_v9, -inf }
 0x3b0   :  { %830 = vmax.xlane.f32.xlu0 %v829_v10 }
 0x431   :  { %v319_v11 = vpop.xlane.xlu0 %318 }
 0x432   :  { %v320_v12 = vsub.f32 %v315_v59, %v319_v11  ;;  %v487_v13 = vpop.xlane.xlu1 %486  ;;  %v2858_v59 = vpack.c.bf16 %v924_v58, %v923_v57  ;;  %v1169_v58 = vld [vmem:[%s3659_s12 + $0x30] sm:$0xff] }
 0x433   :  { %v488_v14 = vsub.f32 %v484_v61, %v487_v13  ;;  %v926_v61 = vld [vmem:[%s3653_s6 + $0x18] sm:$0xff] }
 0x434   :  { %v321_v15 = vmul.f32 1.442695, %v320_v12  ;;  %2859 = vmatprep.subr.bf16.mxu0 %v2858_v59  ;;  %v2862_v62 = vpack.c.bf16 %v926_v61, %v925_v60  ;;  %v2514_v61 = vld [vmem:[%s3658_s11] ss:$0 sm:$0xff] }
 0x435   :  { %v489_v16 = vmul.f32 1.442695, %v488_v14  ;;  %2861 = vmatpush3.bf16.msra.mxu0 %v2858_v59  ;;  %v1170_v59 = vld [vmem:[%s3659_s12 + $0x38] sm:$0xff] }
 0x436   :  { %2948 = vpow2.f32 %v321_v15  ;;  %2863 = vmatprep.subr.bf16.mxu0 %v2862_v62  ;;  %v2886_v60 = vpack.c.bf16 %v1170_v59, %v1169_v58 }
 0x437   :  { %2950 = vpow2.f32 %v489_v16 }
 0x439   :  { %v663_v17 = vpop.xlane.xlu0 %662  ;;  %2865 = vmatpush3.bf16.msra.mxu0 %v2862_v62 }
 0x43a   :  { %v664_v18 = vsub.f32 %v660_v4, %v663_v17 }
 0x43c   :  { %v665_v19 = vmul.f32 1.442695, %v664_v18 }
 0x43d   :  { %v831_v26 = vpop.xlane.xlu0 %830 }
 0x43e   :  { %2952 = vpow2.f32 %v665_v19  ;;  %v832_v27 = vsub.f32 %v828_v9, %v831_v26  ;;  %v1063_v26 = vld [vmem:[%s3657_s10 + $0x10] sm:$0xff] }
 0x440   :  { %v2949_v20 = vpop.eup %2948  ;;  %v833_v28 = vmul.f32 1.442695, %v832_v27  ;;  %v1064_v27 = vld [vmem:[%s3657_s10 + $0x18] sm:$0xff] }
 0x441   :  { %v2951_v21 = vpop.eup %2950  ;;  %v323_v22 = vsel %vm316_vm3, %v2949_v20, 0.0 }
 0x442   :  { %324 = vadd.xlane.f32.xlu0 %v323_v22  ;;  %v491_v23 = vsel %vm316_vm3, %v2951_v21, 0.0  ;;  %2954 = vpow2.f32 %v833_v28  ;;  %v2870_v28 = vpack.c.bf16 %v1064_v27, %v1063_v26 }
 0x443   :  { %492 = vadd.xlane.f32.xlu1 %v491_v23 }
 0x448   :  { %v2953_v24 = vpop.eup %2952 }
 0x449   :  { %v667_v25 = vsel %vm316_vm3, %v2953_v24, 0.0 }
 0x44a   :  { %668 = vadd.xlane.f32.xlu0 %v667_v25 }
 0x44c   :  { %v2955_v29 = vpop.eup %2954 }
 0x44d   :  { %v835_v30 = vsel %vm316_vm3, %v2955_v29, 0.0 }
 0x454   :  { %496 = vrot.lane.b32.xlu1 %v3276_v40, %s3108_s1 }
 0x458   :  { %672 = vrot.lane.b32.xlu1 %v3282_v41, %s3109_s3 }
 0x460   :  { %328 = vrot.lane.b32.xlu0 %v3276_v40, %s3109_s3 }
 0x47c   :  { %836 = vadd.xlane.f32.xlu1 %v835_v30 }
 0x48d   :  { %840 = vrot.lane.b32.xlu1 %v3282_v41, %s3108_s1 }
 0x4cf   :  { %v325_v31 = vpop.xlane.xlu0 %324 }
 0x4d0   :  { %2956 = vrcp.f32 %v325_v31  ;;  %v493_v32 = vpop.xlane.xlu1 %492 }
 0x4d1   :  { %2958 = vrcp.f32 %v493_v32 }
 0x4d4   :  { %v497_v39 = vpop.permute.xlu1 %496 }
 0x4d7   :  { %v669_v34 = vpop.xlane.xlu0 %668 }
 0x4d8   :  { %2960 = vrcp.f32 %v669_v34  ;;  %v673_v43 = vpop.permute.xlu1 %672 }
 0x4da   :  { %v2957_v37 = vpop.eup %2956 }
 0x4db   :  { %v327_v38 = vmul.f32 %v2957_v37, %v2949_v20  ;;  %v329_v40 = vpop.permute.xlu0 %328  ;;  %v2959_v42 = vpop.eup %2958 }
 0x4dc   :  { %2683 = vmatpush3.msra.mxu1 %v329_v40  ;;  %v495_v41 = vmul.f32 %v2959_v42, %v2951_v21  ;;  %v2513_v42 = vld [vmem:[%s3656_s9] ss:$0 sm:$0xff] }
 0x4dd   :  { %2685 = vmatmul.mubr.msk.f32.vlgmr.msra.gmra.mrb[4].mxu1 %vm316_vm3, %v327_v38  ;;  %2692 = vmatprep.subr.mxu1 %v3103_v36 }
 0x4de   :  { %2693 = vmatpush3.msra.mxu1 %v497_v39  ;;  %2694 = vmatprep.mubr.msk.f32.mxu1 %vm3104_vm1, %v3103_v36  ;;  %v2512_v39 = vld [vmem:[%s3655_s8] ss:$0 sm:$0xff] }
 0x4df   :  { %2702 = vmatprep.subr.mxu1 %v3103_v36 }
 0x4e1   :  { %2695 = vmatmul.mubr.msk.f32.vlgmr.msra.gmra.mrb[6].mxu1 %vm316_vm3, %v495_v41 }
 0x4e2   :  { %v2961_v44 = vpop.eup %2960  ;;  %2703 = vmatpush3.msra.mxu1 %v673_v43  ;;  %2704 = vmatprep.mubr.msk.f32.mxu1 %vm3104_vm1, %v3103_v36 }
 0x4e3   :  { %v671_v45 = vmul.f32 %v2961_v44, %v2953_v24  ;;  %2712 = vmatprep.subr.mxu1 %v3103_v36  ;;  %v1062_v24 = vld [vmem:[%s3657_s10 + $0x8] sm:$0xff] }
 0x4e5   :  { %2705 = vmatmul.mubr.msk.f32.vlgmr.msra.gmra.mrb[8].mxu1 %vm316_vm3, %v671_v45 }
 0x4e6   :  { %2714 = vmatprep.mubr.msk.f32.mxu1 %vm3104_vm1, %v3103_v36 }
 0x509   :  { %v837_v46 = vpop.xlane.xlu1 %836 }
 0x50a   :  { %2962 = vrcp.f32 %v837_v46 }
 0x50d   :  { %v841_v47 = vpop.permute.xlu1 %840 }
 0x50e   :  { %2713 = vmatpush3.msra.mxu1 %v841_v47 }
 0x514   :  { %v2963_v48 = vpop.eup %2962 }
 0x515   :  { %v839_v49 = vmul.f32 %v2963_v48, %v2955_v29  ;;  %v1163_v48 = vld [vmem:[%s3659_s12] sm:$0xff] }
 0x517   :  { %2715 = vmatmul.mubr.msk.f32.vlgmr.msra.gmra.mrb[10].mxu1 %vm316_vm3, %v839_v49  ;;  %v1164_v49 = vld [vmem:[%s3659_s12 + $0x8] sm:$0xff] }
 0x5b0   :  { %v400_v50 = vpop.f32.mrb[4].mxu1 }
 0x5b1   :  { %404 = vst.msk [vmem:[#allocation2] sm:$0xff] %vm235_vm2, %v400_v50  ;;  %v2686_v51 = vpop.f32.mrb[5].mxu1  ;;  %v2874_v50 = vpack.c.bf16 %v1164_v49, %v1163_v48 }
 0x5b2   :  { %v1165_v51 = vld [vmem:[%s3659_s12 + $0x10] sm:$0xff] }
 0x5b3   :  { %2875 = vmatprep.subr.bf16.mxu0 %v2874_v50 }
 0x5b4   :  { %v568_v53 = vpop.f32.mrb[6].mxu1 }
 0x5b5   :  { %573 = vrot.lane.b32.xlu0 %v568_v53, %s3110_s18  ;;  %v2696_v54 = vpop.f32.mrb[7].mxu1  ;;  %v1166_v53 = vld [vmem:[%s3659_s12 + $0x18] sm:$0xff] }
 0x5b6   :  { %v2878_v54 = vpack.c.bf16 %v1166_v53, %v1165_v51 }
 0x5b8   :  { %v744_v55 = vpop.f32.mrb[8].mxu1 }
 0x5b9   :  { %748 = vst.msk [vmem:[#allocation2 + $0x8] sm:$0xff] %vm235_vm2, %v744_v55  ;;  %v2706_v56 = vpop.f32.mrb[9].mxu1  ;;  %v1167_v55 = vld [vmem:[%s3659_s12 + $0x20] sm:$0xff] }
 0x5ba   :  { %v1168_v56 = vld [vmem:[%s3659_s12 + $0x28] sm:$0xff] }
 0x5bb   :  { %v2882_v57 = vpack.c.bf16 %v1168_v56, %v1167_v55  ;;  %v2527_v56 = vld [vmem:[%s3652_s5 + $0x1] ss:$0 sm:$0xff]  ;;  %s3111_s5 = smov [#allocation9]  }
 0x5ea   :  { %v912_v63 = vpop.f32.mrb[10].mxu1 }
 0x5eb   :  { %917 = vrot.lane.b32.xlu1 %v912_v63, %s3110_s18  ;;  %v2716_v1 = vpop.f32.mrb[11].mxu1 }
 0x627   :  { %v574_v2 = vpop.permute.xlu0 %573 }
 0x628   :  { %577 = vst.msk [vmem:[#allocation2] sm:$0xff] %vm576_vm4, %v574_v2 }
 0x62f   :  { %v921_v3 = vld [vmem:[#allocation2] sm:$0xff] }
 0x630   :  { %2725 = vmatprep.mubr.msk.f32.mxu0 %vm95_vm0, %v921_v3 }
 0x65d   :  { %v918_v4 = vpop.permute.xlu1 %917 }
 0x65e   :  { %920 = vst.msk [vmem:[#allocation2 + $0x8] sm:$0xff] %vm576_vm4, %v918_v4 }
 0x665   :  { %v922_v5 = vld [vmem:[#allocation2 + $0x8] sm:$0xff] }
 0x666   :  { %2726 = vmatmul.mubr.msk.f32.vlgmr.msra.gmra.mrb[6].mxu0 %vm95_vm0, %v922_v5 }
 0x667   :  { %2877 = vmatpush3.bf16.msra.mxu0 %v2874_v50  ;;  %v2521_v50 = vld [vmem:[%s3662_s15] ss:$0 sm:$0xff] }
 0x668   :  { %2879 = vmatprep.subr.bf16.mxu0 %v2878_v54 }
 0x66b   :  { %2881 = vmatpush3.bf16.msra.mxu0 %v2878_v54 }
 0x66c   :  { %2883 = vmatprep.subr.bf16.mxu0 %v2882_v57 }
 0x66f   :  { %2885 = vmatpush3.bf16.msra.mxu0 %v2882_v57 }
 0x670   :  { %2887 = vmatprep.subr.bf16.mxu0 %v2886_v60 }
 0x673   :  { %2889 = vmatpush3.bf16.msra.mxu0 %v2886_v60 }
 0x674   :  { %2779 = vmatprep.subr.mxu0 %v3103_v36 }
 0x739   :  { %v2727_v7 = vpop.f32.mrb[6].mxu0 }
 0x73a   :  { %v1012_v8 = vadd.f32 %v2727_v7, %v2509_v6  ;;  %v1006_v9 = vpop.f32.mrb[7].mxu0 }
 0x73b   :  { %v1007_v10 = vadd.f32 %v2509_v6, %v1006_v9 }
 0x73c   :  { %v1016_v11 = vadd.f32 %v1012_v8, %v3263_v35 }
 0x73d   :  { %v1015_v12 = vadd.f32 %v1007_v10, %v3259_v33  ;;  %v1061_v33 = vld [vmem:[%s3657_s10] sm:$0xff] }
 0x73e   :  { %v1022_v13 = vsel %vm95_vm0, %v1016_v11, 0.0  ;;  %v2866_v25 = vpack.c.bf16 %v1062_v24, %v1061_v33 }
 0x73f   :  { %1023 = vadd.xlane.f32.xlu1 %v1022_v13  ;;  %v1019_v14 = vsel %vm95_vm0, %v1015_v12, 0.0  ;;  %v2517_v13 = vld [vmem:[%s3660_s13] ss:$0 sm:$0xff] }
 0x740   :  { %1020 = vadd.xlane.f32.xlu0 %v1019_v14  ;;  %2867 = vmatprep.subr.bf16.mxu1 %v2866_v25 }
 0x741   :  { %2869 = vmatpush3.bf16.msra.mxu1 %v2866_v25 }
 0x742   :  { %2871 = vmatprep.subr.bf16.mxu1 %v2870_v28 }
 0x745   :  { %2873 = vmatpush3.bf16.msra.mxu1 %v2870_v28 }
 0x7cc   :  { %v1024_v15 = vpop.xlane.xlu1 %1023 }
 0x7cd   :  { %v1026_v16 = vmul.f32 0.03125, %v1024_v15  ;;  %v1021_v17 = vpop.xlane.xlu0 %1020 }
 0x7ce   :  { %v1025_v18 = vmul.f32 0.03125, %v1021_v17 }
 0x7cf   :  { %v1028_v19 = vsub.f32 %v1016_v11, %v1026_v16 }
 0x7d0   :  { %v1027_v20 = vsub.f32 %v1015_v12, %v1025_v18 }
 0x7d1   :  { %v1030_v23 = vmul.f32 %v1028_v19, %v1028_v19 }
 0x7d2   :  { %v1029_v21 = vmul.f32 %v1027_v20, %v1027_v20 }
 0x7d3   :  { %v1034_v35 = vsel %vm95_vm0, %v1030_v23, 0.0 }
 0x7d4   :  { %v1031_v22 = vsel %vm95_vm0, %v1029_v21, 0.0 }
 0x7d5   :  { %1032 = vadd.xlane.f32.xlu0 %v1031_v22 }
 0x7d9   :  { %1035 = vadd.xlane.f32.xlu0 %v1034_v35 }
 0x862   :  { %v1033_v29 = vpop.xlane.xlu0 %1032 }
 0x863   :  { %v1037_v30 = vmul.f32 0.03125, %v1033_v29 }
 0x865   :  { %v1039_v31 = vadd.f32 1e-12, %v1037_v30  ;;  %v2522_v30 = vld [vmem:[%s3651_s4 + $0x20] sm:$0xff] }
 0x866   :  { %v1036_v32 = vpop.xlane.xlu0 %1035 }
 0x867   :  { %2964 = vrsqrt.f32 %v1039_v31  ;;  %v1038_v34 = vmul.f32 0.03125, %v1036_v32  ;;  %v2523_v31 = vld [vmem:[%s3651_s4 + $0x28] sm:$0xff] }
 0x868   :  { %v2890_v32 = vpack.c.bf16 %v2523_v31, %v2522_v30 }
 0x869   :  { %v1040_v37 = vadd.f32 1e-12, %v1038_v34  ;;  %v2524_v34 = vld [vmem:[%s3651_s4 + $0x30] sm:$0xff] }
 0x86a   :  { %2891 = vmatprep.subr.bf16.mxu1 %v2890_v32 }
 0x86b   :  { %2966 = vrsqrt.f32 %v1040_v37  ;;  %v2525_v37 = vld [vmem:[%s3651_s4 + $0x38] sm:$0xff] }
 0x871   :  { %v2965_v38 = vpop.eup %2964 }
 0x872   :  { %v1043_v40 = vmul.f32 %v2965_v38, %v1027_v20  ;;  %v2894_v38 = vpack.c.bf16 %v2525_v37, %v2524_v34 }
 0x874   :  { %v1051_v41 = vmul.f32 %v2512_v39, %v1043_v40 }
 0x875   :  { %v2967_v43 = vpop.eup %2966 }
 0x876   :  { %v1044_v44 = vmul.f32 %v2967_v43, %v1028_v19  ;;  %v1059_v45 = vadd.f32 %v2513_v42, %v1051_v41 }
 0x878   :  { %v1052_v46 = vmul.f32 %v2512_v39, %v1044_v44  ;;  %2736 = vmatprep.mubr.msk.f32.mxu1 %vm95_vm0, %v1059_v45 }
 0x87a   :  { %v1060_v47 = vadd.f32 %v2513_v42, %v1052_v46  ;;  %v2520_v46 = vld [vmem:[%s3661_s14] ss:$0 sm:$0xff] }
 0x87c   :  { %2737 = vmatmul.mubr.msk.f32.vlgmr.msra.gmra.mrb[12].mxu1 %vm95_vm0, %v1060_v47 }
 0x87d   :  { %2893 = vmatpush3.bf16.msra.mxu1 %v2890_v32 }
 0x87e   :  { %2895 = vmatprep.subr.bf16.mxu1 %v2894_v38 }
 0x881   :  { %2897 = vmatpush3.bf16.msra.mxu1 %v2894_v38 }
 0x882   :  { %2769 = vmatprep.subr.mxu1 %v3103_v36 }
 0x94f   :  { %v2738_v62 = vpop.f32.mrb[12].mxu1 }
 0x950   :  { %v1150_v63 = vadd.f32 %v2738_v62, %v2514_v61  ;;  %v1144_v1 = vpop.f32.mrb[13].mxu1 }
 0x951   :  { %v1145_v2 = vadd.f32 %v2514_v61, %v1144_v1 }
 0x952   :  { %v1156_v3 = vmul.f32 0.70710677, %v1150_v63  ;;  %v1154_v10 = vmul.f32 0.5, %v1150_v63 }
 0x953   :  { %v1155_v4 = vmul.f32 0.70710677, %v1145_v2  ;;  %v1153_v8 = vmul.f32 0.5, %v1145_v2 }
 0x954   :  { %2968 = verf.f32 %v1156_v3 }
 0x955   :  { %2970 = verf.f32 %v1155_v4 }
 0x95e   :  { %v2969_v5 = vpop.eup %2968 }
 0x95f   :  { %v2971_v6 = vpop.eup %2970  ;;  %v1160_v7 = vadd.f32 1.0, %v2969_v5 }
 0x960   :  { %v1159_v9 = vadd.f32 1.0, %v2971_v6 }
 0x961   :  { %v1162_v12 = vmul.f32 %v1160_v7, %v1154_v10 }
 0x962   :  { %v1161_v11 = vmul.f32 %v1159_v9, %v1153_v8 }
 0x964   :  { %2755 = vmatprep.mubr.msk.f32.mxu0 %vm1178_vm5, %v1161_v11 }
 0x965   :  { %2756 = vmatmul.mubr.msk.f32.vlgmr.msra.gmra.mrb[8].mxu0 %vm1178_vm5, %v1162_v12 }
 0x966   :  { %2781 = vmatprep.mubr.msk.f32.mxu0 %vm3104_vm1, %v3103_v36 }
 0xa38   :  { %v2757_v14 = vpop.f32.mrb[8].mxu0 }
 0xa39   :  { %v1257_v15 = vadd.f32 %v2757_v14, %v2517_v13  ;;  %v1251_v16 = vpop.f32.mrb[9].mxu0 }
 0xa3a   :  { %v1252_v17 = vadd.f32 %v2517_v13, %v1251_v16 }
 0xa3b   :  { %v1261_v18 = vadd.f32 %v1257_v15, %v1060_v47 }
 0xa3c   :  { %v1260_v19 = vadd.f32 %v1252_v17, %v1059_v45 }
 0xa3d   :  { %v1267_v20 = vsel %vm95_vm0, %v1261_v18, 0.0 }
 0xa3e   :  { %1268 = vadd.xlane.f32.xlu1 %v1267_v20  ;;  %v1264_v21 = vsel %vm95_vm0, %v1260_v19, 0.0 }
 0xa3f   :  { %1265 = vadd.xlane.f32.xlu0 %v1264_v21 }
 0xacb   :  { %v1269_v22 = vpop.xlane.xlu1 %1268 }
 0xacc   :  { %v1271_v23 = vmul.f32 0.03125, %v1269_v22  ;;  %v1266_v35 = vpop.xlane.xlu0 %1265 }
 0xacd   :  { %v1270_v33 = vmul.f32 0.03125, %v1266_v35 }
 0xace   :  { %v1273_v24 = vsub.f32 %v1261_v18, %v1271_v23 }
 0xacf   :  { %v1272_v25 = vsub.f32 %v1260_v19, %v1270_v33 }
 0xad0   :  { %v1275_v26 = vmul.f32 %v1273_v24, %v1273_v24 }
 0xad1   :  { %v1274_v27 = vmul.f32 %v1272_v25, %v1272_v25 }
 0xad2   :  { %v1279_v28 = vsel %vm95_vm0, %v1275_v26, 0.0 }
 0xad3   :  { %1280 = vadd.xlane.f32.xlu1 %v1279_v28  ;;  %v1276_v29 = vsel %vm95_vm0, %v1274_v27, 0.0 }
 0xad4   :  { %1277 = vadd.xlane.f32.xlu0 %v1276_v29 }
 0xb60   :  { %v1281_v39 = vpop.xlane.xlu1 %1280 }
 0xb61   :  { %v1283_v40 = vmul.f32 0.03125, %v1281_v39  ;;  %v1278_v42 = vpop.xlane.xlu0 %1277 }
 0xb62   :  { %v1282_v41 = vmul.f32 0.03125, %v1278_v42 }
 0xb63   :  { %v1285_v43 = vadd.f32 1e-12, %v1283_v40 }
 0xb64   :  { %v1284_v44 = vadd.f32 1e-12, %v1282_v41 }
 0xb65   :  { %2972 = vrsqrt.f32 %v1285_v43 }
 0xb66   :  { %2974 = vrsqrt.f32 %v1284_v44 }
 0xb6f   :  { %v2973_v45 = vpop.eup %2972 }
 0xb70   :  { %v2975_v47 = vpop.eup %2974  ;;  %v1289_v48 = vmul.f32 %v2973_v45, %v1273_v24 }
 0xb71   :  { %v1288_v49 = vmul.f32 %v2975_v47, %v1272_v25 }
 0xb72   :  { %v1297_v51 = vmul.f32 %v2520_v46, %v1289_v48 }
 0xb73   :  { %v1296_v53 = vmul.f32 %v2520_v46, %v1288_v49 }
 0xb74   :  { %v3460_v55 = vadd.f32 %v2521_v50, %v1297_v51 }
 0xb75   :  { %v3458_v54 = vadd.f32 %v2521_v50, %v1296_v53 }
 0xb77   :  { %2766 = vmatprep.mubr.msk.f32.mxu1 %vm95_vm0, %v3458_v54 }
 0xb78   :  { %2767 = vmatmul.mubr.msk.f32.vlgmr.msra.gmra.mrb[14].mxu1 %vm95_vm0, %v3460_v55 }
 0xb79   :  { %2771 = vmatprep.mubr.msk.f32.mxu1 %vm3104_vm1, %v3103_v36 }
 0xc4b   :  { %v2768_v57 = vpop.f32.mrb[14].mxu1 }
 0xc4c   :  { %v1391_v58 = vpop.f32.mrb[15].mxu1  ;;  %v3477_v60 = vadd.f32 %v2768_v57, %v2527_v56 }
 0xc4d   :  { %v3471_v59 = vadd.f32 %v2527_v56, %v1391_v58 }
 0xc4f   :  { %1569 = vrot.lane.b32.xlu1 %v3471_v59, %s3105_s30  ;;  %1401 = vrot.lane.b32.xlu0 %v3471_v59, %s3106_s0 }
 0xc53   :  { %1567 = vrot.lane.b32.xlu1 %v3471_v59, %s3107_s24  ;;  %1908 = vrot.lane.b32.xlu0 %v3477_v60, %s3105_s30  ;;  %s2479_s30 = sshll.u32 %s3111_s5, 4  ;;  %s2480_s30 = int_to_ptr.vmem [resolvable:$true] %s2479_s30 }
 0xc54   :  { %p3075_p11 = scmp.lt.s32.totalorder %s2480_s30, %s2480_s30 }
 0xc57   :  { %1740 = vrot.lane.b32.xlu1 %v3477_v60, %s3106_s0 }
 0xc5b   :  { %1906 = vrot.lane.b32.xlu1 %v3477_v60, %s3107_s24 }
 0xcc1   :  { %v1570_v61 = vpop.permute.xlu1 %1569  ;;  %v1402_v62 = vpop.permute.xlu0 %1401 }
 0xcc2   :  { %2770 = vmatpush3.xpose.msk.msra.mxu1 %vm235_vm2, %v1402_v62  ;;  %2780 = vmatpush3.xpose.msk.msra.mxu0 %vm235_vm2, %v1570_v61 }
 0xcc3   :  { %2789 = vmatprep.subr.mxu0 %v3103_v36  ;;  %2774 = vmatprep.subr.mxu1 %v3103_v36 }
 0xcc5   :  { %v1568_v63 = vpop.permute.xlu1 %1567  ;;  %2772 = vmatmul.mubr.msk.f32.vlgmr.msra.gmra.mrb[16].mxu1 %vm235_vm2, %v3471_v59  ;;  %v1909_v2 = vpop.permute.xlu0 %1908 }
 0xcc6   :  { %2782 = vmatmul.mubr.msk.f32.vlgmr.msra.gmra.mrb[10].mxu0 %vm235_vm2, %v1568_v63  ;;  %2776 = vmatprep.mubr.msk.f32.mxu1 %vm3104_vm1, %v3103_v36 }
 0xcc7   :  { %2791 = vmatprep.mubr.msk.f32.mxu0 %vm3104_vm1, %v3103_v36 }
 0xcc9   :  { %v1741_v1 = vpop.permute.xlu1 %1740 }
 0xcca   :  { %2790 = vmatpush3.xpose.msk.msra.mxu0 %vm235_vm2, %v1741_v1 }
 0xccb   :  { %2799 = vmatprep.subr.mxu0 %v3103_v36 }
 0xccd   :  { %2792 = vmatmul.mubr.msk.f32.vlgmr.msra.gmra.mrb[12].mxu0 %vm235_vm2, %v3477_v60  ;;  %v1907_v3 = vpop.permute.xlu1 %1906 }
 0xcce   :  { %2800 = vmatpush3.xpose.msk.msra.mxu0 %vm235_vm2, %v1909_v2  ;;  %2801 = vmatprep.mubr.msk.f32.mxu0 %vm3104_vm1, %v3103_v36 }
 0xcd1   :  { %2802 = vmatmul.mubr.msk.f32.vlgmr.msra.gmra.mrb[14].mxu0 %vm235_vm2, %v1907_v3 }
 0xd98   :  { %v1473_v4 = vpop.f32.mrb[16].mxu1 }
 0xd99   :  { %v1477_v5 = vmul.f32 0.25, %v1473_v4  ;;  %v2773_v6 = vpop.f32.mrb[17].mxu1  ;;  %v1641_v7 = vpop.f32.mrb[10].mxu0  ;;  %v2542_v4 = vld [vmem:[%s3653_s6 + $0x20] sm:$0xff] }
 0xd9a   :  { %v1645_v8 = vmul.f32 0.25, %v1641_v7  ;;  %v2783_v9 = vpop.f32.mrb[11].mxu0  ;;  %v2544_v7 = vld [vmem:[%s3653_s6 + $0x30] sm:$0xff] }
 0xd9b   :  { %v1478_v10 = vadd.f32 %v1477_v5, %v3314_v52  ;;  %v2543_v5 = vld [vmem:[%s3653_s6 + $0x28] sm:$0xff] }
 0xd9c   :  { %v1646_v11 = vadd.f32 %v1645_v8, %v3314_v52  ;;  %v2898_v6 = vpack.c.bf16 %v2543_v5, %v2542_v4  ;;  %v2545_v8 = vld [vmem:[%s3653_s6 + $0x38] sm:$0xff]  ;;  %v2559_v5 = vld [vmem:[%s3658_s11 + $0x1] ss:$0 sm:$0xff] }
 0xd9d   :  { %v1479_v12 = vsel %vm316_vm3, %v1478_v10, -inf  ;;  %v2902_v9 = vpack.c.bf16 %v2545_v8, %v2544_v7 }
 0xd9e   :  { %1480 = vmax.xlane.f32.xlu0 %v1479_v12  ;;  %v1647_v13 = vsel %vm316_vm3, %v1646_v11, -inf  ;;  %2899 = vmatprep.subr.bf16.mxu0 %v2898_v6 }
 0xd9f   :  { %1648 = vmax.xlane.f32.xlu1 %v1647_v13  ;;  %2901 = vmatpush3.bf16.msra.mxu0 %v2898_v6 }
 0xda0   :  { %v1812_v14 = vpop.f32.mrb[12].mxu0  ;;  %2903 = vmatprep.subr.bf16.mxu0 %v2902_v9 }
 0xda1   :  { %v1816_v15 = vmul.f32 0.25, %v1812_v14  ;;  %v2793_v16 = vpop.f32.mrb[13].mxu0 }
 0xda2   :  { %v2547_v16 = vld [vmem:[%s3654_s7 + $0x1] ss:$0 sm:$0xff] }
 0xda3   :  { %v1817_v17 = vadd.f32 %v1816_v15, %v3320_v0  ;;  %2905 = vmatpush3.bf16.msra.mxu0 %v2902_v9 }
 0xda4   :  { %v1980_v18 = vpop.f32.mrb[14].mxu0 }
 0xda5   :  { %v1984_v19 = vmul.f32 0.25, %v1980_v18  ;;  %v2803_v20 = vpop.f32.mrb[15].mxu0  ;;  %v1818_v21 = vsel %vm316_vm3, %v1817_v17, -inf }
 0xda6   :  { %1819 = vmax.xlane.f32.xlu0 %v1818_v21 }
 0xda7   :  { %v1985_v22 = vadd.f32 %v1984_v19, %v3320_v0 }
 0xda9   :  { %v1986_v52 = vsel %vm316_vm3, %v1985_v22, -inf }
 0xdaa   :  { %1987 = vmax.xlane.f32.xlu0 %v1986_v52 }
 0xe2b   :  { %v1481_v23 = vpop.xlane.xlu0 %1480 }
 0xe2c   :  { %v1482_v35 = vsub.f32 %v1478_v10, %v1481_v23  ;;  %v1649_v33 = vpop.xlane.xlu1 %1648 }
 0xe2d   :  { %v1650_v24 = vsub.f32 %v1646_v11, %v1649_v33 }
 0xe2e   :  { %v1483_v25 = vmul.f32 1.442695, %v1482_v35 }
 0xe2f   :  { %v1651_v26 = vmul.f32 1.442695, %v1650_v24 }
 0xe30   :  { %2976 = vpow2.f32 %v1483_v25 }
 0xe31   :  { %2978 = vpow2.f32 %v1651_v26 }
 0xe33   :  { %v1820_v27 = vpop.xlane.xlu0 %1819 }
 0xe34   :  { %v1821_v28 = vsub.f32 %v1817_v17, %v1820_v27 }
 0xe36   :  { %v1822_v29 = vmul.f32 1.442695, %v1821_v28 }
 0xe37   :  { %v1988_v38 = vpop.xlane.xlu0 %1987 }
 0xe38   :  { %2980 = vpow2.f32 %v1822_v29  ;;  %v1989_v39 = vsub.f32 %v1985_v22, %v1988_v38 }
 0xe3a   :  { %v2977_v30 = vpop.eup %2976  ;;  %v1990_v40 = vmul.f32 1.442695, %v1989_v39 }
 0xe3b   :  { %v2979_v31 = vpop.eup %2978  ;;  %v1485_v32 = vsel %vm316_vm3, %v2977_v30, 0.0 }
 0xe3c   :  { %1486 = vadd.xlane.f32.xlu0 %v1485_v32  ;;  %v1653_v0 = vsel %vm316_vm3, %v2979_v31, 0.0  ;;  %2982 = vpow2.f32 %v1990_v40 }
 0xe3d   :  { %1654 = vadd.xlane.f32.xlu1 %v1653_v0  ;;  %v2556_v0 = vld [vmem:[%s3657_s10 + $0x30] sm:$0xff] }
 0xe42   :  { %v2981_v34 = vpop.eup %2980 }
 0xe43   :  { %v1824_v37 = vsel %vm316_vm3, %v2981_v34, 0.0 }
 0xe44   :  { %1825 = vadd.xlane.f32.xlu0 %v1824_v37 }
 0xe46   :  { %v2983_v42 = vpop.eup %2982 }
 0xe47   :  { %v1992_v41 = vsel %vm316_vm3, %v2983_v42, 0.0 }
 0xe4e   :  { %1658 = vrot.lane.b32.xlu1 %v3471_v59, %s3108_s1 }
 0xe52   :  { %1829 = vrot.lane.b32.xlu1 %v3477_v60, %s3109_s3 }
 0xe5a   :  { %1490 = vrot.lane.b32.xlu0 %v3471_v59, %s3109_s3 }
 0xe76   :  { %1993 = vadd.xlane.f32.xlu1 %v1992_v41 }
 0xe87   :  { %1997 = vrot.lane.b32.xlu1 %v3477_v60, %s3108_s1 }
 0xec9   :  { %v1487_v43 = vpop.xlane.xlu0 %1486 }
 0xeca   :  { %2984 = vrcp.f32 %v1487_v43  ;;  %v1655_v44 = vpop.xlane.xlu1 %1654 }
 0xecb   :  { %2986 = vrcp.f32 %v1655_v44 }
 0xece   :  { %v1659_v48 = vpop.permute.xlu1 %1658 }
 0xed1   :  { %v1826_v45 = vpop.xlane.xlu0 %1825 }
 0xed2   :  { %2988 = vrcp.f32 %v1826_v45  ;;  %v1830_v53 = vpop.permute.xlu1 %1829  ;;  %v2552_v45 = vld [vmem:[%s3655_s8 + $0x1] ss:$0 sm:$0xff] }
 0xed4   :  { %v2985_v46 = vpop.eup %2984 }
 0xed5   :  { %v1489_v47 = vmul.f32 %v2985_v46, %v2977_v30  ;;  %v1491_v49 = vpop.permute.xlu0 %1490  ;;  %v2987_v50 = vpop.eup %2986 }
 0xed6   :  { %2775 = vmatpush3.msra.mxu1 %v1491_v49  ;;  %v1657_v51 = vmul.f32 %v2987_v50, %v2979_v31  ;;  %v2555_v31 = vld [vmem:[%s3657_s10 + $0x28] sm:$0xff] }
 0xed7   :  { %2777 = vmatmul.mubr.msk.f32.vlgmr.msra.gmra.mrb[18].mxu1 %vm316_vm3, %v1489_v47  ;;  %2784 = vmatprep.subr.mxu1 %v3103_v36  ;;  %v2553_v47 = vld [vmem:[%s3656_s9 + $0x1] ss:$0 sm:$0xff] }
 0xed8   :  { %2785 = vmatpush3.msra.mxu1 %v1659_v48  ;;  %2786 = vmatprep.mubr.msk.f32.mxu1 %vm3104_vm1, %v3103_v36 }
 0xed9   :  { %2794 = vmatprep.subr.mxu1 %v3103_v36 }
 0xedb   :  { %2787 = vmatmul.mubr.msk.f32.vlgmr.msra.gmra.mrb[20].mxu1 %vm316_vm3, %v1657_v51 }
 0xedc   :  { %v2989_v56 = vpop.eup %2988  ;;  %2795 = vmatpush3.msra.mxu1 %v1830_v53  ;;  %2796 = vmatprep.mubr.msk.f32.mxu1 %vm3104_vm1, %v3103_v36 }
 0xedd   :  { %v1828_v57 = vmul.f32 %v2989_v56, %v2981_v34  ;;  %2804 = vmatprep.subr.mxu1 %v3103_v36  ;;  %v2557_v34 = vld [vmem:[%s3657_s10 + $0x38] sm:$0xff] }
 0xede   :  { %v2910_v37 = vpack.c.bf16 %v2557_v34, %v2556_v0 }
 0xedf   :  { %2797 = vmatmul.mubr.msk.f32.vlgmr.msra.gmra.mrb[22].mxu1 %vm316_vm3, %v1828_v57  ;;  %v2562_v57 = vld [vmem:[%s3659_s12 + $0x40] sm:$0xff] }
 0xee0   :  { %2806 = vmatprep.mubr.msk.f32.mxu1 %vm3104_vm1, %v3103_v36 }
 0xf03   :  { %v1994_v58 = vpop.xlane.xlu1 %1993 }
 0xf04   :  { %2990 = vrcp.f32 %v1994_v58  ;;  %v2563_v58 = vld [vmem:[%s3659_s12 + $0x48] sm:$0xff] }
 0xf07   :  { %v1998_v59 = vpop.permute.xlu1 %1997 }
 0xf08   :  { %2805 = vmatpush3.msra.mxu1 %v1998_v59  ;;  %v2914_v59 = vpack.c.bf16 %v2563_v58, %v2562_v57 }
 0xf0a   :  { %2915 = vmatprep.subr.bf16.mxu0 %v2914_v59 }
 0xf0e   :  { %v2991_v60 = vpop.eup %2990 }
 0xf0f   :  { %v1996_v61 = vmul.f32 %v2991_v60, %v2983_v42  ;;  %v2564_v60 = vld [vmem:[%s3659_s12 + $0x50] sm:$0xff] }
 0xf11   :  { %2807 = vmatmul.mubr.msk.f32.vlgmr.msra.gmra.mrb[24].mxu1 %vm316_vm3, %v1996_v61  ;;  %v2565_v61 = vld [vmem:[%s3659_s12 + $0x58] sm:$0xff] }
 0xfaa   :  { %v1562_v62 = vpop.f32.mrb[18].mxu1 }
 0xfab   :  { %1566 = vst.msk [vmem:[#allocation2] sm:$0xff] %vm235_vm2, %v1562_v62  ;;  %v2778_v63 = vpop.f32.mrb[19].mxu1  ;;  %v2918_v62 = vpack.c.bf16 %v2565_v61, %v2564_v60 }
 0xfac   :  { %v2566_v63 = vld [vmem:[%s3659_s12 + $0x60] sm:$0xff] }
 0xfae   :  { %v1730_v1 = vpop.f32.mrb[20].mxu1 }
 0xfaf   :  { %1735 = vrot.lane.b32.xlu0 %v1730_v1, %s3110_s18  ;;  %v2788_v2 = vpop.f32.mrb[21].mxu1  ;;  %v2567_v1 = vld [vmem:[%s3659_s12 + $0x68] sm:$0xff] }
 0xfb0   :  { %v2922_v2 = vpack.c.bf16 %v2567_v1, %v2566_v63 }
 0xfb2   :  { %v1901_v3 = vpop.f32.mrb[22].mxu1 }
 0xfb3   :  { %1905 = vst.msk [vmem:[#allocation2 + $0x8] sm:$0xff] %vm235_vm2, %v1901_v3  ;;  %v2798_v36 = vpop.f32.mrb[23].mxu1  ;;  %v2568_v3 = vld [vmem:[%s3659_s12 + $0x70] sm:$0xff] }
 0xfb4   :  { %v2569_v36 = vld [vmem:[%s3659_s12 + $0x78] sm:$0xff] }
 0xfb5   :  { %v2926_v4 = vpack.c.bf16 %v2569_v36, %v2568_v3 }
 0xfe4   :  { %v2069_v10 = vpop.f32.mrb[24].mxu1 }
 0xfe5   :  { %2074 = vrot.lane.b32.xlu1 %v2069_v10, %s3110_s18  ;;  %v2808_v11 = vpop.f32.mrb[25].mxu1 }
0x1021   :  { %v1736_v12 = vpop.permute.xlu0 %1735 }
0x1022   :  { %1738 = vst.msk [vmem:[#allocation2] sm:$0xff] %vm576_vm4, %v1736_v12 }
0x1029   :  { %v2078_v13 = vld [vmem:[#allocation2] sm:$0xff] }
0x102a   :  { %2817 = vmatprep.mubr.msk.f32.mxu0 %vm95_vm0, %v2078_v13 }
0x1057   :  { %v2075_v14 = vpop.permute.xlu1 %2074 }
0x1058   :  { %2077 = vst.msk [vmem:[#allocation2 + $0x8] sm:$0xff] %vm576_vm4, %v2075_v14 }
0x105f   :  { %v2079_v15 = vld [vmem:[#allocation2 + $0x8] sm:$0xff] }
0x1060   :  { %2818 = vmatmul.mubr.msk.f32.vlgmr.msra.gmra.mrb[16].mxu0 %vm95_vm0, %v2079_v15 }
0x1061   :  { %2917 = vmatpush3.bf16.msra.mxu0 %v2914_v59 }
0x1062   :  { %2919 = vmatprep.subr.bf16.mxu0 %v2918_v62 }
0x1065   :  { %2921 = vmatpush3.bf16.msra.mxu0 %v2918_v62 }
0x1066   :  { %2923 = vmatprep.subr.bf16.mxu0 %v2922_v2 }
0x1069   :  { %2925 = vmatpush3.bf16.msra.mxu0 %v2922_v2 }
0x106a   :  { %2927 = vmatprep.subr.bf16.mxu0 %v2926_v4 }
0x106d   :  { %2929 = vmatpush3.bf16.msra.mxu0 %v2926_v4 }
0x1133   :  { %v2819_v17 = vpop.f32.mrb[16].mxu0 }
0x1134   :  { %v2171_v18 = vadd.f32 %v2819_v17, %v2547_v16  ;;  %v2165_v19 = vpop.f32.mrb[17].mxu0 }
0x1135   :  { %v2166_v20 = vadd.f32 %v2547_v16, %v2165_v19 }
0x1136   :  { %v2175_v21 = vadd.f32 %v2171_v18, %v3460_v55 }
0x1137   :  { %v2174_v22 = vadd.f32 %v2166_v20, %v3458_v54  ;;  %v2554_v54 = vld [vmem:[%s3657_s10 + $0x20] sm:$0xff]  ;;  %s3070_s10 = scalar_lea.vmem %s2480_s30, 256 }
0x1138   :  { %v2183_v52 = vsel %vm95_vm0, %v2175_v21, 0.0  ;;  %v2906_v32 = vpack.c.bf16 %v2555_v31, %v2554_v54  ;;  %v2571_v20 = vld [vmem:[%s3660_s13 + $0x1] ss:$0 sm:$0xff]  ;;  %p3071_p10 = scmp.ne.s32.totalorder %s2480_s30, %s3070_s10  ;;  %p3076_p12 = scmp.lt.s32.totalorder %s3070_s10, %s3070_s10 }
0x1139   :  { %2184 = vadd.xlane.f32.xlu1 %v2183_v52  ;;  %v2180_v23 = vsel %vm95_vm0, %v2174_v22, 0.0 }
0x113a   :  { %2181 = vadd.xlane.f32.xlu0 %v2180_v23  ;;  %2907 = vmatprep.subr.bf16.mxu1 %v2906_v32  ;;  %p3077_p13 = por %p3076_p12, %p3075_p11 }
0x113b   :  { %2909 = vmatpush3.bf16.msra.mxu1 %v2906_v32 }
0x113c   :  { %2911 = vmatprep.subr.bf16.mxu1 %v2910_v37  ;;  %p3078_p0 = pnand %p3077_p13, %p3071_p10 }
0x113f   :  { %2913 = vmatpush3.bf16.msra.mxu1 %v2910_v37 }
0x11c6   :  { %v2185_v35 = vpop.xlane.xlu1 %2184 }
0x11c7   :  { %v2187_v33 = vmul.f32 0.03125, %v2185_v35  ;;  %v2182_v24 = vpop.xlane.xlu0 %2181 }
0x11c8   :  { %v2186_v25 = vmul.f32 0.03125, %v2182_v24 }
0x11c9   :  { %v2189_v26 = vsub.f32 %v2175_v21, %v2187_v33 }
0x11ca   :  { %v2188_v27 = vsub.f32 %v2174_v22, %v2186_v25 }
0x11cb   :  { %v2191_v30 = vmul.f32 %v2189_v26, %v2189_v26 }
0x11cc   :  { %v2190_v28 = vmul.f32 %v2188_v27, %v2188_v27 }
0x11cd   :  { %v2195_v55 = vsel %vm95_vm0, %v2191_v30, 0.0 }
0x11ce   :  { %v2192_v29 = vsel %vm95_vm0, %v2190_v28, 0.0 }
0x11cf   :  { %2193 = vadd.xlane.f32.xlu0 %v2192_v29 }
0x11d3   :  { %2196 = vadd.xlane.f32.xlu0 %v2195_v55 }
0x125c   :  { %v2194_v38 = vpop.xlane.xlu0 %2193 }
0x125d   :  { %v2198_v39 = vmul.f32 0.03125, %v2194_v38 }
0x125f   :  { %v2200_v40 = vadd.f32 1e-12, %v2198_v39 }
0x1260   :  { %v2197_v42 = vpop.xlane.xlu0 %2196 }
0x1261   :  { %2992 = vrsqrt.f32 %v2200_v40  ;;  %v2199_v41 = vmul.f32 0.03125, %v2197_v42 }
0x1263   :  { %v2201_v43 = vadd.f32 1e-12, %v2199_v41 }
0x1265   :  { %2994 = vrsqrt.f32 %v2201_v43  ;;  %v2576_v43 = vld [vmem:[%s3661_s14 + $0x1] ss:$0 sm:$0xff] }
0x126b   :  { %v2993_v44 = vpop.eup %2992 }
0x126c   :  { %v2204_v46 = vmul.f32 %v2993_v44, %v2188_v27 }
0x126e   :  { %v2212_v48 = vmul.f32 %v2552_v45, %v2204_v46 }
0x126f   :  { %v2995_v49 = vpop.eup %2994 }
0x1270   :  { %v2205_v50 = vmul.f32 %v2995_v49, %v2189_v26  ;;  %v2220_v51 = vadd.f32 %v2553_v47, %v2212_v48 }
0x1272   :  { %v2213_v53 = vmul.f32 %v2552_v45, %v2205_v50  ;;  %2828 = vmatprep.mubr.msk.f32.mxu1 %vm95_vm0, %v2220_v51 }
0x1274   :  { %v2221_v56 = vadd.f32 %v2553_v47, %v2213_v53  ;;  %v2577_v47 = vld [vmem:[%s3662_s15 + $0x1] ss:$0 sm:$0xff] }
0x1276   :  { %2829 = vmatmul.mubr.msk.f32.vlgmr.msra.gmra.mrb[26].mxu1 %vm95_vm0, %v2221_v56 }
0x1349   :  { %v2830_v6 = vpop.f32.mrb[26].mxu1 }
0x134a   :  { %v2313_v7 = vadd.f32 %v2830_v6, %v2559_v5  ;;  %v2307_v8 = vpop.f32.mrb[27].mxu1 }
0x134b   :  { %v2308_v9 = vadd.f32 %v2559_v5, %v2307_v8 }
0x134c   :  { %v2319_v10 = vmul.f32 0.70710677, %v2313_v7  ;;  %v2317_v17 = vmul.f32 0.5, %v2313_v7 }
0x134d   :  { %v2318_v11 = vmul.f32 0.70710677, %v2308_v9  ;;  %v2316_v15 = vmul.f32 0.5, %v2308_v9 }
0x134e   :  { %2996 = verf.f32 %v2319_v10 }
0x134f   :  { %2998 = verf.f32 %v2318_v11 }
0x1358   :  { %v2997_v12 = vpop.eup %2996 }
0x1359   :  { %v2999_v13 = vpop.eup %2998  ;;  %v2323_v14 = vadd.f32 1.0, %v2997_v12 }
0x135a   :  { %v2322_v16 = vadd.f32 1.0, %v2999_v13 }
0x135b   :  { %v2325_v19 = vmul.f32 %v2323_v14, %v2317_v17 }
0x135c   :  { %v2324_v18 = vmul.f32 %v2322_v16, %v2316_v15 }
0x135e   :  { %2847 = vmatprep.mubr.msk.f32.mxu0 %vm1178_vm5, %v2324_v18 }
0x135f   :  { %2848 = vmatmul.mubr.msk.f32.vlgmr.msra.gmra.mrb[18].mxu0 %vm1178_vm5, %v2325_v19 }
0x1432   :  { %v2849_v21 = vpop.f32.mrb[18].mxu0 }
0x1433   :  { %v2421_v22 = vadd.f32 %v2849_v21, %v2571_v20  ;;  %v2415_v52 = vpop.f32.mrb[19].mxu0 }
0x1434   :  { %v2416_v23 = vadd.f32 %v2571_v20, %v2415_v52 }
0x1435   :  { %v2425_v35 = vadd.f32 %v2421_v22, %v2221_v56 }
0x1436   :  { %v2424_v33 = vadd.f32 %v2416_v23, %v2220_v51 }
0x1437   :  { %v2433_v24 = vsel %vm95_vm0, %v2425_v35, 0.0 }
0x1438   :  { %2434 = vadd.xlane.f32.xlu1 %v2433_v24  ;;  %v2430_v25 = vsel %vm95_vm0, %v2424_v33, 0.0 }
0x1439   :  { %2431 = vadd.xlane.f32.xlu0 %v2430_v25 }
0x14c5   :  { %v2435_v26 = vpop.xlane.xlu1 %2434 }
0x14c6   :  { %v2437_v27 = vmul.f32 0.03125, %v2435_v26  ;;  %v2432_v28 = vpop.xlane.xlu0 %2431 }
0x14c7   :  { %v2436_v29 = vmul.f32 0.03125, %v2432_v28 }
0x14c8   :  { %v2439_v30 = vsub.f32 %v2425_v35, %v2437_v27 }
0x14c9   :  { %v2438_v55 = vsub.f32 %v2424_v33, %v2436_v29 }
0x14ca   :  { %v2441_v54 = vmul.f32 %v2439_v30, %v2439_v30 }
0x14cb   :  { %v2440_v31 = vmul.f32 %v2438_v55, %v2438_v55 }
0x14cc   :  { %v2445_v32 = vsel %vm95_vm0, %v2441_v54, 0.0 }
0x14cd   :  { %2446 = vadd.xlane.f32.xlu1 %v2445_v32  ;;  %v2442_v0 = vsel %vm95_vm0, %v2440_v31, 0.0 }
0x14ce   :  { %2443 = vadd.xlane.f32.xlu0 %v2442_v0 }
0x155a   :  { %v2447_v34 = vpop.xlane.xlu1 %2446 }
0x155b   :  { %v2449_v37 = vmul.f32 0.03125, %v2447_v34  ;;  %v2444_v38 = vpop.xlane.xlu0 %2443 }
0x155c   :  { %v2448_v39 = vmul.f32 0.03125, %v2444_v38 }
0x155d   :  { %v2451_v40 = vadd.f32 1e-12, %v2449_v37 }
0x155e   :  { %v2450_v42 = vadd.f32 1e-12, %v2448_v39 }
0x155f   :  { %3000 = vrsqrt.f32 %v2451_v40 }
0x1560   :  { %3002 = vrsqrt.f32 %v2450_v42 }
0x1569   :  { %v3001_v41 = vpop.eup %3000 }
0x156a   :  { %v3003_v44 = vpop.eup %3002  ;;  %v2455_v45 = vmul.f32 %v3001_v41, %v2439_v30 }
0x156b   :  { %v2454_v46 = vmul.f32 %v3003_v44, %v2438_v55 }
0x156c   :  { %v2463_v48 = vmul.f32 %v2576_v43, %v2455_v45 }
0x156d   :  { %v2462_v49 = vmul.f32 %v2576_v43, %v2454_v46 }
0x156e   :  { %v2471_v50 = vadd.f32 %v2577_v47, %v2463_v48 }
0x156f   :  { %v2470_v51 = vadd.f32 %v2577_v47, %v2462_v49 }
0x1570   :  { %2473 = vst.msk [vmem:[#allocation9 + $0x8] sm:$0xff] %vm95_vm0, %v2471_v50 }
0x1571   :  { %2472 = vst.msk [vmem:[#allocation9] sm:$0xff] %vm95_vm0, %v2470_v51 }
0x1572   :  { %3081 = shalt.err (!%p3078_p0)
}
0x1573   :  { %s3082_s0 = scalar_lea.hbm %s3663_s16, 256 }
0x1574   :  { %p3083_p1 = scmp.ne.s32.totalorder %s3663_s16, %s3082_s0  ;;  %p3086_p2 = scmp.lt.u32.totalorder %s3082_s0, %s3663_s16 }
0x1576   :  { %p3088_p3 = pnand %p3086_p2, %p3083_p1 }
0x1578   :  { %3091 = shalt.err (!%p3088_p3)
}
0x1579   :  { %2485 = dma.vmem_to_hbm [thread:$0]  %s2480_s30, 256, %s3663_s16, [#allocation5], %s3100_s2, %s3100_s2, %s3101_s22  }
0x157a   :  { %3096 = dma.done.wait [#allocation5], 256  }
0x157b   :  { %3097 = vsyncadd [#allocation5], 4294967040 }
0x157c   :  { %2489 = vsyncpa [#allocation4], 1 }
0x157d   :  { %2490 = vsyncpa [#allocation7], 1 }
0x157e   :  { %2491 = vsyncpa [#allocation5], 1 }

</bundles_post_ra>
